<compile_context>
chip_gen: v7x
topology: tpu7x:2x2x1
jax: 0.10.0
libtpu: 0.0.40
codegen_flags: <defaults>
</compile_context>

<pallas_src>
import math
from functools import partial

import jax
import jax.numpy as jnp
from jax import lax
from jax.experimental import pallas as pl
from jax.experimental.pallas import tpu as pltpu


LANE = 128  # channel padding target (lane width)


# ----------------------------------------------------------------------------
# helpers
# ----------------------------------------------------------------------------
def _vmem():
    return pl.BlockSpec(memory_space=pltpu.MemorySpace.VMEM)


def _pad2(a, rows, cols):
    return jnp.pad(a, ((0, rows - a.shape[0]), (0, cols - a.shape[1])))


def _cpad(c, pad=LANE):
    return ((c + pad - 1) // pad) * pad


def _ratio_at(ratio, i):
    if isinstance(ratio, (list, tuple)):
        return ratio[min(i, len(ratio) - 1)]
    return ratio


# ----------------------------------------------------------------------------
# in-kernel building blocks (traced inside the single fused Pallas kernel)
# ----------------------------------------------------------------------------
def _gcn_norm(a, slw):
    """D^{-1/2}(A + c*I)D^{-1/2} without materializing an NxN identity.

    Returns (a_off, dscale) with A_norm == a_off + diag(dscale).
    A is symmetric, so the axis-0 reduction equals the axis-1 one numerically;
    it is kept as a reduction (instead of transposing a narrow [N,1] vector)
    for layout robustness — both are negligible at this size.
    deg + slw >= slw > 0 (improved=True fill value), so rsqrt is safe even for
    nodes isolated after pooling.
    """
    deg_c = jnp.sum(a, axis=1, keepdims=True) + slw     # [n,1]
    deg_r = jnp.sum(a, axis=0, keepdims=True) + slw     # [1,n]
    dinv_c = lax.rsqrt(deg_c)
    dinv_r = lax.rsqrt(deg_r)
    a_off = a * dinv_c * dinv_r
    dscale = slw * dinv_c * dinv_c
    return a_off, dscale


def _gcn_conv(a_off, dscale, x, w, b, relu):
    """GCNConv: A_norm @ (X @ W) + b, all f32 MXU with f32 accumulation."""
    xw = jnp.dot(x, w, preferred_element_type=jnp.float32)
    h = jnp.dot(a_off, xw, preferred_element_type=jnp.float32)
    h = h + dscale * xw + b
    return jnp.maximum(h, 0.0) if relu else h


# ----------------------------------------------------------------------------
# the single fused GraphUNet kernel
# ----------------------------------------------------------------------------
def _gunet_fused_kernel(*refs, depth, ks, slw):
    it = iter(refs)
    a_ref = next(it)
    x_ref = next(it)
    dw = [next(it) for _ in range(depth + 1)]
    db = [next(it) for _ in range(depth + 1)]
    uw = [next(it) for _ in range(depth)]
    ub = [next(it) for _ in range(depth)]
    pp = [next(it) for _ in range(depth)]
    out_ref = next(it)

    a_cur = a_ref[...]
    x = x_ref[...]

    # ---------------- encoder level 0 ----------------
    a_off, dscale = _gcn_norm(a_cur, slw)
    x = _gcn_conv(a_off, dscale, x, dw[0][...], db[0][...], relu=True)

    xs = [x]                          # skip activations (VMEM-resident)
    norm_cache = [(a_off, dscale)]    # cached normalized adjacency for decoder
    unpool = []                       # P^T matrices for the decoder scatter

    # ---------------- encoder levels 1..depth (pool + conv) ----------------
    for i in range(1, depth + 1):
        n = a_cur.shape[0]
        k = ks[i - 1]
        ri = lax.broadcasted_iota(jnp.int32, (n, n), 0)
        ci = lax.broadcasted_iota(jnp.int32, (n, n), 1)
        offdiag = ri != ci

        # adjacency augmentation: offdiag((A + I)^2) == offdiag(A@A + 2A)
        a_nd = jnp.where(offdiag, a_cur, 0.0)            # remove_self_loops
        a2 = jnp.dot(a_nd, a_nd, preferred_element_type=jnp.float32) + 2.0 * a_nd
        a_aug = jnp.where(offdiag, a2, 0.0)

        # --- TopK pooling, fully in-kernel ---
        # raw score u = x . p / ||p||   (p pre-scaled on host); tanh gate.
        u = jnp.sum(x * pp[i - 1][...], axis=-1, keepdims=True)        # [n,1]
        gate = jnp.tanh(u)
        # row-layout copy of u via ones @ diag(u): exact (single nonzero per
        # column) and avoids transposing a narrow vector.
        diag_u = jnp.where(ri == ci, u, 0.0)
        u_row = jnp.dot(jnp.ones((n, n), jnp.float32), diag_u,
                        preferred_element_type=jnp.float32)            # [i,j] = u[j]
        # strict total order: "i beats j" if higher score, ties broken by index.
        beats = (u > u_row) | ((u == u_row) & (ri < ci))
        bf = jnp.where(beats, 1.0, 0.0)
        rank_row = jnp.sum(bf, axis=0, keepdims=True)                  # [1,n]
        rank_col = (n - 1.0) - jnp.sum(bf, axis=1, keepdims=True)      # [n,1]
        rr = lax.broadcasted_iota(jnp.int32, (k, n), 0).astype(jnp.float32)
        rc = lax.broadcasted_iota(jnp.int32, (n, k), 1).astype(jnp.float32)
        p_sel = jnp.where(rr == rank_row, 1.0, 0.0)    # [k,n]  selection/permutation
        pt_sel = jnp.where(rc == rank_col, 1.0, 0.0)   # [n,k]  == p_sel^T

        # gather as matmuls: x[perm]*score[perm] and a_aug[perm][:,perm]
        x = jnp.dot(p_sel, x * gate, preferred_element_type=jnp.float32)
        a_cur = jnp.dot(jnp.dot(p_sel, a_aug, preferred_element_type=jnp.float32),
                        pt_sel, preferred_element_type=jnp.float32)
        unpool.append(pt_sel)

        a_off, dscale = _gcn_norm(a_cur, slw)
        x = _gcn_conv(a_off, dscale, x, dw[i][...], db[i][...], relu=True)
        if i < depth:
            xs.append(x)
            norm_cache.append((a_off, dscale))

    # ---------------- decoder ----------------
    for i in range(depth):
        j = depth - 1 - i
        res = xs[j]
        a_off, dscale = norm_cache[j]
        # unpool scatter zeros.at[perm].set(x) as a matmul with P^T
        up = jnp.dot(unpool[j], x, preferred_element_type=jnp.float32)
        x = res + up                                    # sum_res=True
        x = _gcn_conv(a_off, dscale, x, uw[i][...], ub[i][...],
                      relu=(i < depth - 1))

    out_ref[...] = x


# ----------------------------------------------------------------------------
# wrapper: one pallas_call for the whole forward
# ----------------------------------------------------------------------------
def graph_unet_forward(x, adj, params, depth, ratio, *, self_loop_weight=2.0):
    n = adj.shape[0]
    # static per-level pool sizes: k = ceil(ratio_i * n_i)
    ks, n_cur = [], n
    for i in range(depth):
        k = int(math.ceil(_ratio_at(ratio, i) * n_cur))
        ks.append(k)
        n_cur = k

    inputs = ([adj, x]
              + params["down_w"] + params["down_b"]
              + params["up_w"] + params["up_b"]
              + params["pool_p_scaled"])
    cout = params["up_w"][-1].shape[1]
    return pl.pallas_call(
        partial(_gunet_fused_kernel, depth=depth, ks=tuple(ks),
                slw=self_loop_weight),
        out_shape=jax.ShapeDtypeStruct((n, cout), jnp.float32),
        in_specs=[_vmem() for _ in inputs],
        out_specs=_vmem(),
    )(*inputs)


def gunet_forward(x, adj, params, depth, ratio, out_dim):
    # GUNet.forward in eval mode: dropout_adj(p=0.2) and dropout(p=0.92) are
    # identities when training=False, so forward == GraphUNet(x, edge_index).
    out = graph_unet_forward(x, adj, params, depth, ratio)
    return out[:, :out_dim]


# ----------------------------------------------------------------------------
# deterministic parameter init (logical shapes follow GraphUNet(in, hid, out,
# depth)); parameters are zero-padded to lane-dense channel widths, f32.
# ----------------------------------------------------------------------------
def init_params(key, in_dim, hidden, out_dim, depth):
    dims_down = [(in_dim, hidden)] + [(hidden, hidden)] * depth
    dims_up = [(hidden, hidden)] * (depth - 1) + [(hidden, out_dim)]
    keys = iter(jax.random.split(key, len(dims_down) + len(dims_up) + depth))

    params = {"down_w": [], "down_b": [], "up_w": [], "up_b": [],
              "pool_p_scaled": []}
    for cin, cout in dims_down:
        s = (6.0 / (cin + cout)) ** 0.5  # glorot-uniform like GCNConv
        w = jax.random.uniform(next(keys), (cin, cout), jnp.float32, -s, s)
        params["down_w"].append(_pad2(w, _cpad(cin), _cpad(cout)))
        params["down_b"].append(jnp.zeros((1, _cpad(cout)), jnp.float32))
    for cin, cout in dims_up:
        s = (6.0 / (cin + cout)) ** 0.5
        w = jax.random.uniform(next(keys), (cin, cout), jnp.float32, -s, s)
        params["up_w"].append(_pad2(w, _cpad(cin), _cpad(cout)))
        params["up_b"].append(jnp.zeros((1, _cpad(cout)), jnp.float32))
    for _ in range(depth):
        p = jax.random.uniform(next(keys), (1, hidden), jnp.float32, -1.0, 1.0)
        p = p / jnp.sqrt(jnp.sum(p * p))  # 1/||p|| hoisted out of the kernel
        params["pool_p_scaled"].append(_pad2(p, 1, _cpad(hidden)))
    return params


# ----------------------------------------------------------------------------
if __name__ == "__main__":
    N, IN_DIM, HIDDEN, OUT_DIM, DEPTH, RATIO = 32, 16, 32, 8, 2, 0.5

    key = jax.random.PRNGKey(0)
    kx, kp = jax.random.split(key)

    # node features, channel-padded to a lane-dense width
    x = jax.random.normal(kx, (N, IN_DIM), jnp.float32)
    x_pad = _pad2(x, N, _cpad(IN_DIM))

    # deterministic undirected graph: ring + stride-5 chords, unit edge weights
    src, dst = [], []
    for i in range(N):
        for off in (1, 5):
            j = (i + off) % N
            src += [i, j]
            dst += [j, i]
    adj = jnp.zeros((N, N), jnp.float32).at[jnp.array(src), jnp.array(dst)].set(1.0)

    params = init_params(kp, IN_DIM, HIDDEN, OUT_DIM, DEPTH)

    fwd = jax.jit(partial(gunet_forward, depth=DEPTH, ratio=RATIO,
                          out_dim=OUT_DIM))
    out = jax.block_until_ready(fwd(x_pad, adj, params))

    assert out.shape == (N, OUT_DIM), out.shape
    assert bool(jnp.all(jnp.isfinite(out)))
    print("KERNEL_OK")
</pallas_src>

<mosaic_0001>
module attributes {stable_mosaic.version = 11 : i64} {
  func.func @_gunet_fused_kernel(%arg0: memref<32x32xf32, #tpu.memory_space<vmem>>, %arg1: memref<32x128xf32, #tpu.memory_space<vmem>>, %arg2: memref<128x128xf32, #tpu.memory_space<vmem>>, %arg3: memref<128x128xf32, #tpu.memory_space<vmem>>, %arg4: memref<128x128xf32, #tpu.memory_space<vmem>>, %arg5: memref<1x128xf32, #tpu.memory_space<vmem>>, %arg6: memref<1x128xf32, #tpu.memory_space<vmem>>, %arg7: memref<1x128xf32, #tpu.memory_space<vmem>>, %arg8: memref<128x128xf32, #tpu.memory_space<vmem>>, %arg9: memref<128x128xf32, #tpu.memory_space<vmem>>, %arg10: memref<1x128xf32, #tpu.memory_space<vmem>>, %arg11: memref<1x128xf32, #tpu.memory_space<vmem>>, %arg12: memref<1x128xf32, #tpu.memory_space<vmem>>, %arg13: memref<1x128xf32, #tpu.memory_space<vmem>>, %arg14: memref<32x128xf32, #tpu.memory_space<vmem>>) attributes {dimension_semantics = [], scalar_prefetch = 0 : i64, scratch_operands = 0 : i64, tpu.core_type = #tpu.core_type<tc>} {
    %c0 = arith.constant 0 : index
    %c0_0 = arith.constant 0 : index
    %0 = vector.load %arg0[%c0, %c0_0] : memref<32x32xf32, #tpu.memory_space<vmem>>, vector<32x32xf32>
    %c0_1 = arith.constant 0 : index
    %c0_2 = arith.constant 0 : index
    %1 = vector.load %arg1[%c0_1, %c0_2] : memref<32x128xf32, #tpu.memory_space<vmem>>, vector<32x128xf32>
    %cst = arith.constant dense<0.000000e+00> : vector<32xf32>
    %2 = vector.multi_reduction <add>, %0, %cst [1] : vector<32x32xf32> to vector<32xf32>
    %3 = vector.shape_cast %2 : vector<32xf32> to vector<32x1xf32>
    %cst_3 = arith.constant 2.000000e+00 : f32
    %4 = vector.broadcast %cst_3 : f32 to vector<32x1xf32>
    %5 = arith.addf %3, %4 : vector<32x1xf32>
    %cst_4 = arith.constant dense<0.000000e+00> : vector<32xf32>
    %6 = vector.multi_reduction <add>, %0, %cst_4 [0] : vector<32x32xf32> to vector<32xf32>
    %7 = vector.shape_cast %6 : vector<32xf32> to vector<1x32xf32>
    %cst_5 = arith.constant 2.000000e+00 : f32
    %8 = vector.broadcast %cst_5 : f32 to vector<1x32xf32>
    %9 = arith.addf %7, %8 : vector<1x32xf32>
    %10 = math.rsqrt %5 : vector<32x1xf32>
    %11 = math.rsqrt %9 : vector<1x32xf32>
    %12 = vector.broadcast %10 : vector<32x1xf32> to vector<32x32xf32>
    %13 = arith.mulf %0, %12 : vector<32x32xf32>
    %14 = vector.broadcast %11 : vector<1x32xf32> to vector<32x32xf32>
    %15 = arith.mulf %13, %14 : vector<32x32xf32>
    %cst_6 = arith.constant 2.000000e+00 : f32
    %16 = vector.broadcast %cst_6 : f32 to vector<32x1xf32>
    %17 = arith.mulf %16, %10 : vector<32x1xf32>
    %18 = arith.mulf %17, %10 : vector<32x1xf32>
    %c0_7 = arith.constant 0 : index
    %c0_8 = arith.constant 0 : index
    %19 = vector.load %arg2[%c0_7, %c0_8] : memref<128x128xf32, #tpu.memory_space<vmem>>, vector<128x128xf32>
    %c0_9 = arith.constant 0 : index
    %c0_10 = arith.constant 0 : index
    %20 = vector.load %arg5[%c0_9, %c0_10] : memref<1x128xf32, #tpu.memory_space<vmem>>, vector<1x128xf32>
    %cst_11 = arith.constant dense<0.000000e+00> : vector<32x128xf32>
    %21 = tpu.matmul %1, %19, %cst_11 {dimension_numbers = #tpu.dot_dimension_numbers<[1], [0], [0], [1], [0, 0, 1, 1], [], []>} : vector<32x128xf32>, vector<128x128xf32>, vector<32x128xf32> -> vector<32x128xf32>
    %cst_12 = arith.constant dense<0.000000e+00> : vector<32x128xf32>
    %22 = tpu.matmul %15, %21, %cst_12 {dimension_numbers = #tpu.dot_dimension_numbers<[1], [0], [0], [1], [0, 0, 1, 1], [], []>} : vector<32x32xf32>, vector<32x128xf32>, vector<32x128xf32> -> vector<32x128xf32>
    %23 = vector.broadcast %18 : vector<32x1xf32> to vector<32x128xf32>
    %24 = arith.mulf %23, %21 : vector<32x128xf32>
    %25 = arith.addf %22, %24 : vector<32x128xf32>
    %26 = vector.broadcast %20 : vector<1x128xf32> to vector<32x128xf32>
    %27 = arith.addf %25, %26 : vector<32x128xf32>
    %cst_13 = arith.constant 0.000000e+00 : f32
    %28 = vector.broadcast %cst_13 : f32 to vector<32x128xf32>
    %29 = arith.maximumf %27, %28 : vector<32x128xf32>
    %30 = tpu.iota {dimensions = array<i32: 0>} : vector<32x32xi32>
    %31 = tpu.iota {dimensions = array<i32: 1>} : vector<32x32xi32>
    %32 = arith.cmpi ne, %30, %31 : vector<32x32xi32>
    %cst_14 = arith.constant 0.000000e+00 : f32
    %33 = vector.broadcast %cst_14 : f32 to vector<32x32xf32>
    %34 = arith.select %32, %0, %33 : vector<32x32xi1>, vector<32x32xf32>
    %cst_15 = arith.constant dense<0.000000e+00> : vector<32x32xf32>
    %35 = tpu.matmul %34, %34, %cst_15 {dimension_numbers = #tpu.dot_dimension_numbers<[1], [0], [0], [1], [0, 0, 1, 1], [], []>} : vector<32x32xf32>, vector<32x32xf32>, vector<32x32xf32> -> vector<32x32xf32>
    %cst_16 = arith.constant 2.000000e+00 : f32
    %36 = vector.broadcast %cst_16 : f32 to vector<32x32xf32>
    %37 = arith.mulf %36, %34 : vector<32x32xf32>
    %38 = arith.addf %35, %37 : vector<32x32xf32>
    %cst_17 = arith.constant 0.000000e+00 : f32
    %39 = vector.broadcast %cst_17 : f32 to vector<32x32xf32>
    %40 = arith.select %32, %38, %39 : vector<32x32xi1>, vector<32x32xf32>
    %c0_18 = arith.constant 0 : index
    %c0_19 = arith.constant 0 : index
    %41 = vector.load %arg12[%c0_18, %c0_19] : memref<1x128xf32, #tpu.memory_space<vmem>>, vector<1x128xf32>
    %42 = vector.broadcast %41 : vector<1x128xf32> to vector<32x128xf32>
    %43 = arith.mulf %29, %42 : vector<32x128xf32>
    %cst_20 = arith.constant dense<0.000000e+00> : vector<32xf32>
    %44 = vector.multi_reduction <add>, %43, %cst_20 [1] : vector<32x128xf32> to vector<32xf32>
    %45 = vector.shape_cast %44 : vector<32xf32> to vector<32x1xf32>
    %46 = math.tanh %45 : vector<32x1xf32>
    %47 = arith.cmpi eq, %30, %31 : vector<32x32xi32>
    %cst_21 = arith.constant 0.000000e+00 : f32
    %48 = vector.shape_cast %45 : vector<32x1xf32> to vector<32x1xf32>
    %49 = vector.broadcast %48 : vector<32x1xf32> to vector<32x32xf32>
    %50 = vector.broadcast %cst_21 : f32 to vector<32x32xf32>
    %51 = arith.select %47, %49, %50 : vector<32x32xi1>, vector<32x32xf32>
    %cst_22 = arith.constant 1.000000e+00 : f32
    %52 = vector.broadcast %cst_22 : f32 to vector<32x32xf32>
    %cst_23 = arith.constant dense<0.000000e+00> : vector<32x32xf32>
    %53 = tpu.matmul %52, %51, %cst_23 {dimension_numbers = #tpu.dot_dimension_numbers<[1], [0], [0], [1], [0, 0, 1, 1], [], []>} : vector<32x32xf32>, vector<32x32xf32>, vector<32x32xf32> -> vector<32x32xf32>
    %54 = vector.broadcast %45 : vector<32x1xf32> to vector<32x32xf32>
    %55 = arith.cmpf ogt, %54, %53 : vector<32x32xf32>
    %56 = vector.broadcast %45 : vector<32x1xf32> to vector<32x32xf32>
    %57 = arith.cmpf oeq, %56, %53 : vector<32x32xf32>
    %58 = arith.cmpi slt, %30, %31 : vector<32x32xi32>
    %59 = arith.andi %57, %58 : vector<32x32xi1>
    %60 = arith.ori %55, %59 : vector<32x32xi1>
    %cst_24 = arith.constant 1.000000e+00 : f32
    %cst_25 = arith.constant 0.000000e+00 : f32
    %61 = vector.broadcast %cst_24 : f32 to vector<32x32xf32>
    %62 = vector.broadcast %cst_25 : f32 to vector<32x32xf32>
    %63 = arith.select %60, %61, %62 : vector<32x32xi1>, vector<32x32xf32>
    %cst_26 = arith.constant dense<0.000000e+00> : vector<32xf32>
    %64 = vector.multi_reduction <add>, %63, %cst_26 [0] : vector<32x32xf32> to vector<32xf32>
    %65 = vector.shape_cast %64 : vector<32xf32> to vector<1x32xf32>
    %cst_27 = arith.constant dense<0.000000e+00> : vector<32xf32>
    %66 = vector.multi_reduction <add>, %63, %cst_27 [1] : vector<32x32xf32> to vector<32xf32>
    %67 = vector.shape_cast %66 : vector<32xf32> to vector<32x1xf32>
    %cst_28 = arith.constant 3.100000e+01 : f32
    %68 = vector.broadcast %cst_28 : f32 to vector<32x1xf32>
    %69 = arith.subf %68, %67 : vector<32x1xf32>
    %70 = tpu.iota {dimensions = array<i32: 0>} : vector<16x32xi32>
    %71 = arith.sitofp %70 : vector<16x32xi32> to vector<16x32xf32>
    %72 = tpu.iota {dimensions = array<i32: 1>} : vector<32x16xi32>
    %73 = arith.sitofp %72 : vector<32x16xi32> to vector<32x16xf32>
    %74 = vector.broadcast %65 : vector<1x32xf32> to vector<16x32xf32>
    %75 = arith.cmpf oeq, %71, %74 : vector<16x32xf32>
    %cst_29 = arith.constant 1.000000e+00 : f32
    %cst_30 = arith.constant 0.000000e+00 : f32
    %76 = vector.broadcast %cst_29 : f32 to vector<16x32xf32>
    %77 = vector.broadcast %cst_30 : f32 to vector<16x32xf32>
    %78 = arith.select %75, %76, %77 : vector<16x32xi1>, vector<16x32xf32>
    %79 = vector.broadcast %69 : vector<32x1xf32> to vector<32x16xf32>
    %80 = arith.cmpf oeq, %73, %79 : vector<32x16xf32>
    %cst_31 = arith.constant 1.000000e+00 : f32
    %cst_32 = arith.constant 0.000000e+00 : f32
    %81 = vector.broadcast %cst_31 : f32 to vector<32x16xf32>
    %82 = vector.broadcast %cst_32 : f32 to vector<32x16xf32>
    %83 = arith.select %80, %81, %82 : vector<32x16xi1>, vector<32x16xf32>
    %84 = vector.broadcast %46 : vector<32x1xf32> to vector<32x128xf32>
    %85 = arith.mulf %29, %84 : vector<32x128xf32>
    %cst_33 = arith.constant dense<0.000000e+00> : vector<16x128xf32>
    %86 = tpu.matmul %78, %85, %cst_33 {dimension_numbers = #tpu.dot_dimension_numbers<[1], [0], [0], [1], [0, 0, 1, 1], [], []>} : vector<16x32xf32>, vector<32x128xf32>, vector<16x128xf32> -> vector<16x128xf32>
    %cst_34 = arith.constant dense<0.000000e+00> : vector<16x32xf32>
    %87 = tpu.matmul %78, %40, %cst_34 {dimension_numbers = #tpu.dot_dimension_numbers<[1], [0], [0], [1], [0, 0, 1, 1], [], []>} : vector<16x32xf32>, vector<32x32xf32>, vector<16x32xf32> -> vector<16x32xf32>
    %cst_35 = arith.constant dense<0.000000e+00> : vector<16x16xf32>
    %88 = tpu.matmul %87, %83, %cst_35 {dimension_numbers = #tpu.dot_dimension_numbers<[1], [0], [0], [1], [0, 0, 1, 1], [], []>} : vector<16x32xf32>, vector<32x16xf32>, vector<16x16xf32> -> vector<16x16xf32>
    %cst_36 = arith.constant dense<0.000000e+00> : vector<16xf32>
    %89 = vector.multi_reduction <add>, %88, %cst_36 [1] : vector<16x16xf32> to vector<16xf32>
    %90 = vector.shape_cast %89 : vector<16xf32> to vector<16x1xf32>
    %cst_37 = arith.constant 2.000000e+00 : f32
    %91 = vector.broadcast %cst_37 : f32 to vector<16x1xf32>
    %92 = arith.addf %90, %91 : vector<16x1xf32>
    %cst_38 = arith.constant dense<0.000000e+00> : vector<16xf32>
    %93 = vector.multi_reduction <add>, %88, %cst_38 [0] : vector<16x16xf32> to vector<16xf32>
    %94 = vector.shape_cast %93 : vector<16xf32> to vector<1x16xf32>
    %cst_39 = arith.constant 2.000000e+00 : f32
    %95 = vector.broadcast %cst_39 : f32 to vector<1x16xf32>
    %96 = arith.addf %94, %95 : vector<1x16xf32>
    %97 = math.rsqrt %92 : vector<16x1xf32>
    %98 = math.rsqrt %96 : vector<1x16xf32>
    %99 = vector.broadcast %97 : vector<16x1xf32> to vector<16x16xf32>
    %100 = arith.mulf %88, %99 : vector<16x16xf32>
    %101 = vector.broadcast %98 : vector<1x16xf32> to vector<16x16xf32>
    %102 = arith.mulf %100, %101 : vector<16x16xf32>
    %cst_40 = arith.constant 2.000000e+00 : f32
    %103 = vector.broadcast %cst_40 : f32 to vector<16x1xf32>
    %104 = arith.mulf %103, %97 : vector<16x1xf32>
    %105 = arith.mulf %104, %97 : vector<16x1xf32>
    %c0_41 = arith.constant 0 : index
    %c0_42 = arith.constant 0 : index
    %106 = vector.load %arg3[%c0_41, %c0_42] : memref<128x128xf32, #tpu.memory_space<vmem>>, vector<128x128xf32>
    %c0_43 = arith.constant 0 : index
    %c0_44 = arith.constant 0 : index
    %107 = vector.load %arg6[%c0_43, %c0_44] : memref<1x128xf32, #tpu.memory_space<vmem>>, vector<1x128xf32>
    %cst_45 = arith.constant dense<0.000000e+00> : vector<16x128xf32>
    %108 = tpu.matmul %86, %106, %cst_45 {dimension_numbers = #tpu.dot_dimension_numbers<[1], [0], [0], [1], [0, 0, 1, 1], [], []>} : vector<16x128xf32>, vector<128x128xf32>, vector<16x128xf32> -> vector<16x128xf32>
    %cst_46 = arith.constant dense<0.000000e+00> : vector<16x128xf32>
    %109 = tpu.matmul %102, %108, %cst_46 {dimension_numbers = #tpu.dot_dimension_numbers<[1], [0], [0], [1], [0, 0, 1, 1], [], []>} : vector<16x16xf32>, vector<16x128xf32>, vector<16x128xf32> -> vector<16x128xf32>
    %110 = vector.broadcast %105 : vector<16x1xf32> to vector<16x128xf32>
    %111 = arith.mulf %110, %108 : vector<16x128xf32>
    %112 = arith.addf %109, %111 : vector<16x128xf32>
    %113 = vector.broadcast %107 : vector<1x128xf32> to vector<16x128xf32>
    %114 = arith.addf %112, %113 : vector<16x128xf32>
    %cst_47 = arith.constant 0.000000e+00 : f32
    %115 = vector.broadcast %cst_47 : f32 to vector<16x128xf32>
    %116 = arith.maximumf %114, %115 : vector<16x128xf32>
    %117 = tpu.iota {dimensions = array<i32: 0>} : vector<16x16xi32>
    %118 = tpu.iota {dimensions = array<i32: 1>} : vector<16x16xi32>
    %119 = arith.cmpi ne, %117, %118 : vector<16x16xi32>
    %cst_48 = arith.constant 0.000000e+00 : f32
    %120 = vector.broadcast %cst_48 : f32 to vector<16x16xf32>
    %121 = arith.select %119, %88, %120 : vector<16x16xi1>, vector<16x16xf32>
    %cst_49 = arith.constant dense<0.000000e+00> : vector<16x16xf32>
    %122 = tpu.matmul %121, %121, %cst_49 {dimension_numbers = #tpu.dot_dimension_numbers<[1], [0], [0], [1], [0, 0, 1, 1], [], []>} : vector<16x16xf32>, vector<16x16xf32>, vector<16x16xf32> -> vector<16x16xf32>
    %cst_50 = arith.constant 2.000000e+00 : f32
    %123 = vector.broadcast %cst_50 : f32 to vector<16x16xf32>
    %124 = arith.mulf %123, %121 : vector<16x16xf32>
    %125 = arith.addf %122, %124 : vector<16x16xf32>
    %cst_51 = arith.constant 0.000000e+00 : f32
    %126 = vector.broadcast %cst_51 : f32 to vector<16x16xf32>
    %127 = arith.select %119, %125, %126 : vector<16x16xi1>, vector<16x16xf32>
    %c0_52 = arith.constant 0 : index
    %c0_53 = arith.constant 0 : index
    %128 = vector.load %arg13[%c0_52, %c0_53] : memref<1x128xf32, #tpu.memory_space<vmem>>, vector<1x128xf32>
    %129 = vector.broadcast %128 : vector<1x128xf32> to vector<16x128xf32>
    %130 = arith.mulf %116, %129 : vector<16x128xf32>
    %cst_54 = arith.constant dense<0.000000e+00> : vector<16xf32>
    %131 = vector.multi_reduction <add>, %130, %cst_54 [1] : vector<16x128xf32> to vector<16xf32>
    %132 = vector.shape_cast %131 : vector<16xf32> to vector<16x1xf32>
    %133 = math.tanh %132 : vector<16x1xf32>
    %134 = arith.cmpi eq, %117, %118 : vector<16x16xi32>
    %cst_55 = arith.constant 0.000000e+00 : f32
    %135 = vector.shape_cast %132 : vector<16x1xf32> to vector<16x1xf32>
    %136 = vector.broadcast %135 : vector<16x1xf32> to vector<16x16xf32>
    %137 = vector.broadcast %cst_55 : f32 to vector<16x16xf32>
    %138 = arith.select %134, %136, %137 : vector<16x16xi1>, vector<16x16xf32>
    %cst_56 = arith.constant 1.000000e+00 : f32
    %139 = vector.broadcast %cst_56 : f32 to vector<16x16xf32>
    %cst_57 = arith.constant dense<0.000000e+00> : vector<16x16xf32>
    %140 = tpu.matmul %139, %138, %cst_57 {dimension_numbers = #tpu.dot_dimension_numbers<[1], [0], [0], [1], [0, 0, 1, 1], [], []>} : vector<16x16xf32>, vector<16x16xf32>, vector<16x16xf32> -> vector<16x16xf32>
    %141 = vector.broadcast %132 : vector<16x1xf32> to vector<16x16xf32>
    %142 = arith.cmpf ogt, %141, %140 : vector<16x16xf32>
    %143 = vector.broadcast %132 : vector<16x1xf32> to vector<16x16xf32>
    %144 = arith.cmpf oeq, %143, %140 : vector<16x16xf32>
    %145 = arith.cmpi slt, %117, %118 : vector<16x16xi32>
    %146 = arith.andi %144, %145 : vector<16x16xi1>
    %147 = arith.ori %142, %146 : vector<16x16xi1>
    %cst_58 = arith.constant 1.000000e+00 : f32
    %cst_59 = arith.constant 0.000000e+00 : f32
    %148 = vector.broadcast %cst_58 : f32 to vector<16x16xf32>
    %149 = vector.broadcast %cst_59 : f32 to vector<16x16xf32>
    %150 = arith.select %147, %148, %149 : vector<16x16xi1>, vector<16x16xf32>
    %cst_60 = arith.constant dense<0.000000e+00> : vector<16xf32>
    %151 = vector.multi_reduction <add>, %150, %cst_60 [0] : vector<16x16xf32> to vector<16xf32>
    %152 = vector.shape_cast %151 : vector<16xf32> to vector<1x16xf32>
    %cst_61 = arith.constant dense<0.000000e+00> : vector<16xf32>
    %153 = vector.multi_reduction <add>, %150, %cst_61 [1] : vector<16x16xf32> to vector<16xf32>
    %154 = vector.shape_cast %153 : vector<16xf32> to vector<16x1xf32>
    %cst_62 = arith.constant 1.500000e+01 : f32
    %155 = vector.broadcast %cst_62 : f32 to vector<16x1xf32>
    %156 = arith.subf %155, %154 : vector<16x1xf32>
    %157 = tpu.iota {dimensions = array<i32: 0>} : vector<8x16xi32>
    %158 = arith.sitofp %157 : vector<8x16xi32> to vector<8x16xf32>
    %159 = tpu.iota {dimensions = array<i32: 1>} : vector<16x8xi32>
    %160 = arith.sitofp %159 : vector<16x8xi32> to vector<16x8xf32>
    %161 = vector.broadcast %152 : vector<1x16xf32> to vector<8x16xf32>
    %162 = arith.cmpf oeq, %158, %161 : vector<8x16xf32>
    %cst_63 = arith.constant 1.000000e+00 : f32
    %cst_64 = arith.constant 0.000000e+00 : f32
    %163 = vector.broadcast %cst_63 : f32 to vector<8x16xf32>
    %164 = vector.broadcast %cst_64 : f32 to vector<8x16xf32>
    %165 = arith.select %162, %163, %164 : vector<8x16xi1>, vector<8x16xf32>
    %166 = vector.broadcast %156 : vector<16x1xf32> to vector<16x8xf32>
    %167 = arith.cmpf oeq, %160, %166 : vector<16x8xf32>
    %cst_65 = arith.constant 1.000000e+00 : f32
    %cst_66 = arith.constant 0.000000e+00 : f32
    %168 = vector.broadcast %cst_65 : f32 to vector<16x8xf32>
    %169 = vector.broadcast %cst_66 : f32 to vector<16x8xf32>
    %170 = arith.select %167, %168, %169 : vector<16x8xi1>, vector<16x8xf32>
    %171 = vector.broadcast %133 : vector<16x1xf32> to vector<16x128xf32>
    %172 = arith.mulf %116, %171 : vector<16x128xf32>
    %cst_67 = arith.constant dense<0.000000e+00> : vector<8x128xf32>
    %173 = tpu.matmul %165, %172, %cst_67 {dimension_numbers = #tpu.dot_dimension_numbers<[1], [0], [0], [1], [0, 0, 1, 1], [], []>} : vector<8x16xf32>, vector<16x128xf32>, vector<8x128xf32> -> vector<8x128xf32>
    %cst_68 = arith.constant dense<0.000000e+00> : vector<8x16xf32>
    %174 = tpu.matmul %165, %127, %cst_68 {dimension_numbers = #tpu.dot_dimension_numbers<[1], [0], [0], [1], [0, 0, 1, 1], [], []>} : vector<8x16xf32>, vector<16x16xf32>, vector<8x16xf32> -> vector<8x16xf32>
    %cst_69 = arith.constant dense<0.000000e+00> : vector<8x8xf32>
    %175 = tpu.matmul %174, %170, %cst_69 {dimension_numbers = #tpu.dot_dimension_numbers<[1], [0], [0], [1], [0, 0, 1, 1], [], []>} : vector<8x16xf32>, vector<16x8xf32>, vector<8x8xf32> -> vector<8x8xf32>
    %cst_70 = arith.constant dense<0.000000e+00> : vector<8xf32>
    %176 = vector.multi_reduction <add>, %175, %cst_70 [1] : vector<8x8xf32> to vector<8xf32>
    %177 = vector.shape_cast %176 : vector<8xf32> to vector<8x1xf32>
    %cst_71 = arith.constant 2.000000e+00 : f32
    %178 = vector.broadcast %cst_71 : f32 to vector<8x1xf32>
    %179 = arith.addf %177, %178 : vector<8x1xf32>
    %cst_72 = arith.constant dense<0.000000e+00> : vector<8xf32>
    %180 = vector.multi_reduction <add>, %175, %cst_72 [0] : vector<8x8xf32> to vector<8xf32>
    %181 = vector.shape_cast %180 : vector<8xf32> to vector<1x8xf32>
    %cst_73 = arith.constant 2.000000e+00 : f32
    %182 = vector.broadcast %cst_73 : f32 to vector<1x8xf32>
    %183 = arith.addf %181, %182 : vector<1x8xf32>
    %184 = math.rsqrt %179 : vector<8x1xf32>
    %185 = math.rsqrt %183 : vector<1x8xf32>
    %186 = vector.broadcast %184 : vector<8x1xf32> to vector<8x8xf32>
    %187 = arith.mulf %175, %186 : vector<8x8xf32>
    %188 = vector.broadcast %185 : vector<1x8xf32> to vector<8x8xf32>
    %189 = arith.mulf %187, %188 : vector<8x8xf32>
    %cst_74 = arith.constant 2.000000e+00 : f32
    %190 = vector.broadcast %cst_74 : f32 to vector<8x1xf32>
    %191 = arith.mulf %190, %184 : vector<8x1xf32>
    %192 = arith.mulf %191, %184 : vector<8x1xf32>
    %c0_75 = arith.constant 0 : index
    %c0_76 = arith.constant 0 : index
    %193 = vector.load %arg4[%c0_75, %c0_76] : memref<128x128xf32, #tpu.memory_space<vmem>>, vector<128x128xf32>
    %c0_77 = arith.constant 0 : index
    %c0_78 = arith.constant 0 : index
    %194 = vector.load %arg7[%c0_77, %c0_78] : memref<1x128xf32, #tpu.memory_space<vmem>>, vector<1x128xf32>
    %cst_79 = arith.constant dense<0.000000e+00> : vector<8x128xf32>
    %195 = tpu.matmul %173, %193, %cst_79 {dimension_numbers = #tpu.dot_dimension_numbers<[1], [0], [0], [1], [0, 0, 1, 1], [], []>} : vector<8x128xf32>, vector<128x128xf32>, vector<8x128xf32> -> vector<8x128xf32>
    %cst_80 = arith.constant dense<0.000000e+00> : vector<8x128xf32>
    %196 = tpu.matmul %189, %195, %cst_80 {dimension_numbers = #tpu.dot_dimension_numbers<[1], [0], [0], [1], [0, 0, 1, 1], [], []>} : vector<8x8xf32>, vector<8x128xf32>, vector<8x128xf32> -> vector<8x128xf32>
    %197 = vector.broadcast %192 : vector<8x1xf32> to vector<8x128xf32>
    %198 = arith.mulf %197, %195 : vector<8x128xf32>
    %199 = arith.addf %196, %198 : vector<8x128xf32>
    %200 = vector.broadcast %194 : vector<1x128xf32> to vector<8x128xf32>
    %201 = arith.addf %199, %200 : vector<8x128xf32>
    %cst_81 = arith.constant 0.000000e+00 : f32
    %202 = vector.broadcast %cst_81 : f32 to vector<8x128xf32>
    %203 = arith.maximumf %201, %202 : vector<8x128xf32>
    %cst_82 = arith.constant dense<0.000000e+00> : vector<16x128xf32>
    %204 = tpu.matmul %170, %203, %cst_82 {dimension_numbers = #tpu.dot_dimension_numbers<[1], [0], [0], [1], [0, 0, 1, 1], [], []>} : vector<16x8xf32>, vector<8x128xf32>, vector<16x128xf32> -> vector<16x128xf32>
    %205 = arith.addf %116, %204 : vector<16x128xf32>
    %c0_83 = arith.constant 0 : index
    %c0_84 = arith.constant 0 : index
    %206 = vector.load %arg8[%c0_83, %c0_84] : memref<128x128xf32, #tpu.memory_space<vmem>>, vector<128x128xf32>
    %c0_85 = arith.constant 0 : index
    %c0_86 = arith.constant 0 : index
    %207 = vector.load %arg10[%c0_85, %c0_86] : memref<1x128xf32, #tpu.memory_space<vmem>>, vector<1x128xf32>
    %cst_87 = arith.constant dense<0.000000e+00> : vector<16x128xf32>
    %208 = tpu.matmul %205, %206, %cst_87 {dimension_numbers = #tpu.dot_dimension_numbers<[1], [0], [0], [1], [0, 0, 1, 1], [], []>} : vector<16x128xf32>, vector<128x128xf32>, vector<16x128xf32> -> vector<16x128xf32>
    %cst_88 = arith.constant dense<0.000000e+00> : vector<16x128xf32>
    %209 = tpu.matmul %102, %208, %cst_88 {dimension_numbers = #tpu.dot_dimension_numbers<[1], [0], [0], [1], [0, 0, 1, 1], [], []>} : vector<16x16xf32>, vector<16x128xf32>, vector<16x128xf32> -> vector<16x128xf32>
    %210 = vector.broadcast %105 : vector<16x1xf32> to vector<16x128xf32>
    %211 = arith.mulf %210, %208 : vector<16x128xf32>
    %212 = arith.addf %209, %211 : vector<16x128xf32>
    %213 = vector.broadcast %207 : vector<1x128xf32> to vector<16x128xf32>
    %214 = arith.addf %212, %213 : vector<16x128xf32>
    %cst_89 = arith.constant 0.000000e+00 : f32
    %215 = vector.broadcast %cst_89 : f32 to vector<16x128xf32>
    %216 = arith.maximumf %214, %215 : vector<16x128xf32>
    %cst_90 = arith.constant dense<0.000000e+00> : vector<32x128xf32>
    %217 = tpu.matmul %83, %216, %cst_90 {dimension_numbers = #tpu.dot_dimension_numbers<[1], [0], [0], [1], [0, 0, 1, 1], [], []>} : vector<32x16xf32>, vector<16x128xf32>, vector<32x128xf32> -> vector<32x128xf32>
    %218 = arith.addf %29, %217 : vector<32x128xf32>
    %c0_91 = arith.constant 0 : index
    %c0_92 = arith.constant 0 : index
    %219 = vector.load %arg9[%c0_91, %c0_92] : memref<128x128xf32, #tpu.memory_space<vmem>>, vector<128x128xf32>
    %c0_93 = arith.constant 0 : index
    %c0_94 = arith.constant 0 : index
    %220 = vector.load %arg11[%c0_93, %c0_94] : memref<1x128xf32, #tpu.memory_space<vmem>>, vector<1x128xf32>
    %cst_95 = arith.constant dense<0.000000e+00> : vector<32x128xf32>
    %221 = tpu.matmul %218, %219, %cst_95 {dimension_numbers = #tpu.dot_dimension_numbers<[1], [0], [0], [1], [0, 0, 1, 1], [], []>} : vector<32x128xf32>, vector<128x128xf32>, vector<32x128xf32> -> vector<32x128xf32>
    %cst_96 = arith.constant dense<0.000000e+00> : vector<32x128xf32>
    %222 = tpu.matmul %15, %221, %cst_96 {dimension_numbers = #tpu.dot_dimension_numbers<[1], [0], [0], [1], [0, 0, 1, 1], [], []>} : vector<32x32xf32>, vector<32x128xf32>, vector<32x128xf32> -> vector<32x128xf32>
    %223 = vector.broadcast %18 : vector<32x1xf32> to vector<32x128xf32>
    %224 = arith.mulf %223, %221 : vector<32x128xf32>
    %225 = arith.addf %222, %224 : vector<32x128xf32>
    %226 = vector.broadcast %220 : vector<1x128xf32> to vector<32x128xf32>
    %227 = arith.addf %225, %226 : vector<32x128xf32>
    %c0_97 = arith.constant 0 : index
    %c0_98 = arith.constant 0 : index
    %228 = vector.load %arg14[%c0_97, %c0_98] : memref<32x128xf32, #tpu.memory_space<vmem>>, vector<32x128xf32>
    tpu.vector_store %arg14[%c0_97, %c0_98], %227 {strides = array<i32>} : memref<32x128xf32, #tpu.memory_space<vmem>>, vector<32x128xf32>,
    return
  }
}

</mosaic_0001>

<bundles_post_ra>
// kernel: gunet_forward.1
= control target key start
LH: loop header
LB: loop body
LE: loop exit
PB: predicated region body
PF: predicated region fallthrough
CT: control target
= control target key end

     0   :  { %19 = vsyncpa [#allocation3], 0  ;;  %s4077_s0 = inlined_call_operand.hbm [shape: f32[32,32], index: 0, kind: input, shape index: {}]   ;;  %s4078_s1 = inlined_call_operand.hbm [shape: f32[32,128], index: 1, kind: input, shape index: {}]   ;;  %s4079_s2 = inlined_call_operand.hbm [shape: f32[128,128], index: 2, kind: input, shape index: {}]   ;;  %s4080_s3 = inlined_call_operand.hbm [shape: f32[128,128], index: 3, kind: input, shape index: {}]   ;;  %s4081_s4 = inlined_call_operand.hbm [shape: f32[128,128], index: 4, kind: input, shape index: {}]   ;;  %s4082_s5 = inlined_call_operand.vmem [shape: f32[1,128], index: 5, kind: input, shape index: {}]   ;;  %s4083_s6 = inlined_call_operand.vmem [shape: f32[1,128], index: 6, kind: input, shape index: {}]   ;;  %s4084_s7 = inlined_call_operand.vmem [shape: f32[1,128], index: 7, kind: input, shape index: {}]   ;;  %s4085_s8 = inlined_call_operand.hbm [shape: f32[128,128], index: 8, kind: input, shape index: {}]   ;;  %s4086_s9 = inlined_call_operand.hbm [shape: f32[128,128], index: 9, kind: input, shape index: {}]   ;;  %s4087_s10 = inlined_call_operand.vmem [shape: f32[1,128], index: 10, kind: input, shape index: {}]   ;;  %s4088_s11 = inlined_call_operand.vmem [shape: f32[1,128], index: 11, kind: input, shape index: {}]   ;;  %s4089_s12 = inlined_call_operand.vmem [shape: f32[1,128], index: 12, kind: input, shape index: {}]   ;;  %s4090_s13 = inlined_call_operand.vmem [shape: f32[1,128], index: 13, kind: input, shape index: {}]   ;;  %s4091_s14 = inlined_call_operand.vmem [shape: f32[32,128], index: 14, kind: output, shape index: {}]  }
   0x1   :  { %20 = vsyncpa [#allocation5], 0 }
   0x2   :  { %21 = vsyncpa [#allocation8], 0 }
   0x3   :  { %22 = vsyncpa [#allocation11], 0  ;;  %s3416_s29 = smov [#allocation4]   ;;  %s3417_s15 = smov [#allocation7]  }
   0x4   :  { %s40_s30 = sshll.u32 %s3416_s29, 4  ;;  %s64_s16 = sshll.u32 %s3417_s15, 4  ;;  %s41_s30 = int_to_ptr.vmem [resolvable:$true] %s40_s30  ;;  %s3505_s16 = int_to_ptr.vmem [resolvable:$true] %s64_s16 }
   0x5   :  { %s3254_s19 = scalar_lea.hbm %s4078_s1, 512 }
   0x6   :  { %p3255_p0 = scmp.ne.s32.totalorder %s4078_s1, %s3254_s19  ;;  %p3258_p1 = scmp.lt.u32.totalorder %s3254_s19, %s4078_s1 }
   0x8   :  { %p3260_p2 = pnand %p3258_p1, %p3255_p0 }
   0xa   :  { %3263 = shalt.err (!%p3260_p2)
}
   0xb   :  { %s3264_s24 = scalar_lea.vmem %s41_s30, 512  ;;  %p3269_p4 = scmp.lt.s32.totalorder %s41_s30, %s41_s30 }
   0xc   :  { %p3265_p3 = scmp.ne.s32.totalorder %s41_s30, %s3264_s24  ;;  %p3270_p5 = scmp.lt.s32.totalorder %s3264_s24, %s3264_s24 }
   0xe   :  { %p3271_p6 = por %p3270_p5, %p3269_p4 }
  0x10   :  { %p3272_p7 = pnand %p3271_p6, %p3265_p3 }
  0x12   :  { %3275 = shalt.err (!%p3272_p7)
}
  0x13   :  { %s3418_s25 = smov 128   ;;  %s3419_s26 = smov 8  }
  0x14   :  { %46 = dma.hbm_to_vmem [thread:$0]  %s4078_s1, 512, %s41_s30, [#allocation5], %s3418_s25, %s3418_s25, %s3419_s26  }
  0x15   :  { %s3276_s17 = scalar_lea.hbm %s4080_s3, 2048 }
  0x16   :  { %p3277_p8 = scmp.ne.s32.totalorder %s4080_s3, %s3276_s17  ;;  %p3280_p9 = scmp.lt.u32.totalorder %s3276_s17, %s4080_s3 }
  0x18   :  { %p3282_p10 = pnand %p3280_p9, %p3277_p8 }
  0x1a   :  { %3285 = shalt.err (!%p3282_p10)
}
  0x1b   :  { %s3286_s22 = scalar_lea.vmem %s3505_s16, 2048  ;;  %p3291_p12 = scmp.lt.s32.totalorder %s3505_s16, %s3505_s16 }
  0x1c   :  { %p3287_p11 = scmp.ne.s32.totalorder %s3505_s16, %s3286_s22  ;;  %p3292_p13 = scmp.lt.s32.totalorder %s3286_s22, %s3286_s22 }
  0x1e   :  { %p3293_p0 = por %p3292_p13, %p3291_p12 }
  0x20   :  { %p3294_p1 = pnand %p3293_p0, %p3287_p11 }
  0x22   :  { %3297 = shalt.err (!%p3294_p1)
}
  0x23   :  { %70 = dma.hbm_to_vmem [thread:$0]  %s4080_s3, 2048, %s3505_s16, [#allocation8], %s3418_s25, %s3418_s25, %s3419_s26  }
  0x24   :  { %s3420_s23 = smov [#allocation10]   ;;  %s3421_s27 = smov [#allocation2]  }
  0x25   :  { %s94_s24 = sshll.u32 %s3420_s23, 4  ;;  %s28_s28 = sshll.u32 %s3421_s27, 4  ;;  %s95_s24 = int_to_ptr.vmem [resolvable:$true] %s94_s24  ;;  %s3542_s28 = int_to_ptr.vmem [resolvable:$true] %s28_s28 }
  0x26   :  { %s3298_s17 = scalar_lea.hbm %s4085_s8, 2048 }
  0x27   :  { %p3299_p2 = scmp.ne.s32.totalorder %s4085_s8, %s3298_s17  ;;  %p3302_p3 = scmp.lt.u32.totalorder %s3298_s17, %s4085_s8 }
  0x29   :  { %p3304_p4 = pnand %p3302_p3, %p3299_p2 }
  0x2b   :  { %3307 = shalt.err (!%p3304_p4)
}
  0x2c   :  { %s3308_s3 = scalar_lea.vmem %s95_s24, 2048  ;;  %p3313_p6 = scmp.lt.s32.totalorder %s95_s24, %s95_s24 }
  0x2d   :  { %p3309_p5 = scmp.ne.s32.totalorder %s95_s24, %s3308_s3  ;;  %p3314_p7 = scmp.lt.s32.totalorder %s3308_s3, %s3308_s3 }
  0x2f   :  { %p3315_p8 = por %p3314_p7, %p3313_p6 }
  0x31   :  { %p3316_p9 = pnand %p3315_p8, %p3309_p5 }
  0x33   :  { %3319 = shalt.err (!%p3316_p9)
}
  0x34   :  { %100 = dma.hbm_to_vmem [thread:$0]  %s4085_s8, 2048, %s95_s24, [#allocation11], %s3418_s25, %s3418_s25, %s3419_s26  }
  0x35   :  { %s3320_s23 = scalar_lea.hbm %s4077_s0, 512 }
  0x36   :  { %p3321_p10 = scmp.ne.s32.totalorder %s4077_s0, %s3320_s23  ;;  %p3324_p11 = scmp.lt.u32.totalorder %s3320_s23, %s4077_s0 }
  0x38   :  { %p3326_p12 = pnand %p3324_p11, %p3321_p10 }
  0x3a   :  { %3329 = shalt.err (!%p3326_p12)
}
  0x3b   :  { %s3330_s18 = scalar_lea.vmem %s3542_s28, 512  ;;  %p3335_p0 = scmp.lt.s32.totalorder %s3542_s28, %s3542_s28 }
  0x3c   :  { %p3331_p13 = scmp.ne.s32.totalorder %s3542_s28, %s3330_s18  ;;  %p3336_p1 = scmp.lt.s32.totalorder %s3330_s18, %s3330_s18 }
  0x3e   :  { %p3337_p2 = por %p3336_p1, %p3335_p0 }
  0x40   :  { %p3338_p3 = pnand %p3337_p2, %p3331_p13 }
  0x42   :  { %3341 = shalt.err (!%p3338_p3)
}
  0x43   :  { %34 = dma.hbm_to_vmem [thread:$0]  %s4077_s0, 512, %s3542_s28, [#allocation3], %s3418_s25, %s3418_s25, %s3419_s26  }
  0x44   :  { %s3422_s19 = smov [#allocation6]   ;;  %s3423_s21 = smov [#allocation9]  }
  0x45   :  { %s52_s20 = sshll.u32 %s3422_s19, 4  ;;  %s76_s3 = sshll.u32 %s3423_s21, 4  ;;  %s53_s20 = int_to_ptr.vmem [resolvable:$true] %s52_s20  ;;  %s3579_s3 = int_to_ptr.vmem [resolvable:$true] %s76_s3 }
  0x46   :  { %s3342_s1 = scalar_lea.hbm %s4079_s2, 2048 }
  0x47   :  { %p3343_p4 = scmp.ne.s32.totalorder %s4079_s2, %s3342_s1  ;;  %p3346_p5 = scmp.lt.u32.totalorder %s3342_s1, %s4079_s2 }
  0x49   :  { %p3348_p6 = pnand %p3346_p5, %p3343_p4 }
  0x4b   :  { %3351 = shalt.err (!%p3348_p6)
}
  0x4c   :  { %s3352_s0 = scalar_lea.vmem %s53_s20, 2048  ;;  %p3357_p8 = scmp.lt.s32.totalorder %s53_s20, %s53_s20 }
  0x4d   :  { %p3353_p7 = scmp.ne.s32.totalorder %s53_s20, %s3352_s0  ;;  %p3358_p9 = scmp.lt.s32.totalorder %s3352_s0, %s3352_s0 }
  0x4f   :  { %p3359_p10 = por %p3358_p9, %p3357_p8 }
  0x51   :  { %p3360_p11 = pnand %p3359_p10, %p3353_p7 }
  0x53   :  { %3363 = shalt.err (!%p3360_p11)
}
  0x54   :  { %58 = dma.hbm_to_vmem [thread:$0]  %s4079_s2, 2048, %s53_s20, [#allocation5], %s3418_s25, %s3418_s25, %s3419_s26  }
  0x55   :  { %s3364_s8 = scalar_lea.hbm %s4081_s4, 2048 }
  0x56   :  { %p3365_p12 = scmp.ne.s32.totalorder %s4081_s4, %s3364_s8  ;;  %p3368_p13 = scmp.lt.u32.totalorder %s3364_s8, %s4081_s4 }
  0x58   :  { %p3370_p0 = pnand %p3368_p13, %p3365_p12 }
  0x5a   :  { %3373 = shalt.err (!%p3370_p0)
}
  0x5b   :  { %s3374_s22 = scalar_lea.vmem %s3579_s3, 2048  ;;  %p3379_p2 = scmp.lt.s32.totalorder %s3579_s3, %s3579_s3 }
  0x5c   :  { %p3375_p1 = scmp.ne.s32.totalorder %s3579_s3, %s3374_s22  ;;  %p3380_p3 = scmp.lt.s32.totalorder %s3374_s22, %s3374_s22 }
  0x5e   :  { %p3381_p4 = por %p3380_p3, %p3379_p2 }
  0x60   :  { %p3382_p5 = pnand %p3381_p4, %p3375_p1 }
  0x62   :  { %3385 = shalt.err (!%p3382_p5)
}
  0x63   :  { %82 = dma.hbm_to_vmem [thread:$0]  %s4081_s4, 2048, %s3579_s3, [#allocation8], %s3418_s25, %s3418_s25, %s3419_s26  }
  0x64   :  { %s3424_s1 = smov [#allocation12]   ;;  %s3386_s29 = scalar_lea.hbm %s4086_s9, 2048 }
  0x65   :  { %s106_s30 = sshll.u32 %s3424_s1, 4  ;;  %p3387_p6 = scmp.ne.s32.totalorder %s4086_s9, %s3386_s29  ;;  %s107_s30 = int_to_ptr.vmem [resolvable:$true] %s106_s30 }
  0x66   :  { %p3390_p7 = scmp.lt.u32.totalorder %s3386_s29, %s4086_s9 }
  0x68   :  { %p3392_p8 = pnand %p3390_p7, %p3387_p6 }
  0x6a   :  { %3395 = shalt.err (!%p3392_p8)
}
  0x6b   :  { %s3396_s18 = scalar_lea.vmem %s107_s30, 2048  ;;  %p3401_p10 = scmp.lt.s32.totalorder %s107_s30, %s107_s30 }
  0x6c   :  { %p3397_p9 = scmp.ne.s32.totalorder %s107_s30, %s3396_s18  ;;  %p3402_p11 = scmp.lt.s32.totalorder %s3396_s18, %s3396_s18 }
  0x6e   :  { %p3403_p12 = por %p3402_p11, %p3401_p10 }
  0x70   :  { %p3404_p13 = pnand %p3403_p12, %p3397_p9 }
  0x72   :  { %3407 = shalt.err (!%p3404_p13)
}
  0x73   :  { %112 = dma.hbm_to_vmem [thread:$0]  %s4086_s9, 2048, %s107_s30, [#allocation11], %s3418_s25, %s3418_s25, %s3419_s26  }
  0x74   :  { %3408 = dma.done.wait [#allocation3], 512  }
  0x75   :  { %3409 = vsyncadd [#allocation3], 4294966784 }
  0x76   :  { %3410 = dma.done.wait [#allocation5], 2560  }
  0x77   :  { %3411 = vsyncadd [#allocation5], 4294964736 }
  0x78   :  { %3412 = dma.done.wait [#allocation8], 4096  }
  0x79   :  { %3413 = vsyncadd [#allocation8], 4294963200 }
  0x7a   :  { %3414 = dma.done.wait [#allocation11], 4096  }
  0x7b   :  { %3415 = vsyncadd [#allocation11], 4294963200  ;;  %v198_v0 = vld [vmem:[#allocation6] sm:$0xff]  ;;  %v199_v1 = vld [vmem:[#allocation6 + $0x8] sm:$0xff]  ;;  %vm4098_vm0 = vcmask 261120  }
  0x7c   :  { %v200_v2 = vld [vmem:[#allocation6 + $0x10] sm:$0xff]  ;;  %v2954_v3 = vpack.c.bf16 %v199_v1, %v198_v0  ;;  %v201_v4 = vld [vmem:[#allocation6 + $0x18] sm:$0xff]  ;;  %v202_v6 = vld [vmem:[#allocation6 + $0x20] sm:$0xff] }
  0x7d   :  { %v2958_v5 = vpack.c.bf16 %v201_v4, %v200_v2  ;;  %v203_v7 = vld [vmem:[#allocation6 + $0x28] sm:$0xff]  ;;  %v146_v9 = vld [vmem:[#allocation4] sm:$0xff]  ;;  %v204_v10 = vld [vmem:[#allocation6 + $0x30] sm:$0xff] }
  0x7e   :  { %2955 = vmatprep.subr.bf16.mxu0 %v2954_v3  ;;  %v2962_v8 = vpack.c.bf16 %v203_v7, %v202_v6  ;;  %v205_v11 = vld [vmem:[#allocation6 + $0x38] sm:$0xff]  ;;  %2647 = vmatprep.mubr.f32.mxu0 %v146_v9  ;;  %v3631_v12 = vld [vmem:[#allocation2] sm:$0xff]  ;;  %v3635_v14 = vld [vmem:[#allocation2 + $0x10] sm:$0xff]  ;;  %v415_v9 = vlaneseq }
  0x7f   :  { %2957 = vmatpush3.bf16.msra.mxu0 %v2954_v3  ;;  %v151_v13 = vsel %vm4098_vm0, %v3631_v12, 0.0  ;;  %v3637_v15 = vld [vmem:[#allocation2 + $0x8] sm:$0xff]  ;;  %v3639_v16 = vld [vmem:[#allocation2 + $0x18] sm:$0xff]  ;;  %v157_v17 = vsel %vm4098_vm0, %v3635_v14, 0.0  ;;  %v2966_v19 = vpack.c.bf16 %v205_v11, %v204_v10  ;;  %v206_v21 = vld [vmem:[#allocation6 + $0x40] sm:$0xff] }
  0x80   :  { %2959 = vmatprep.subr.bf16.mxu0 %v2958_v5  ;;  %152 = vadd.xlane.f32.xlu0 %v151_v13  ;;  %v154_v18 = vsel %vm4098_vm0, %v3637_v15, 0.0  ;;  %v207_v22 = vld [vmem:[#allocation6 + $0x48] sm:$0xff]  ;;  %v160_v23 = vsel %vm4098_vm0, %v3639_v16, 0.0  ;;  %v208_v27 = vld [vmem:[#allocation6 + $0x50] sm:$0xff]  ;;  %v209_v28 = vld [vmem:[#allocation6 + $0x58] sm:$0xff]  ;;  %v3667_v10 = vshrl.u32 %v415_v9, 7 }
  0x81   :  { %158 = vadd.xlane.f32.xlu1 %v157_v17  ;;  %v167_v20 = vadd.f32 %v154_v18, %v151_v13  ;;  %v2970_v25 = vpack.c.bf16 %v207_v22, %v206_v21  ;;  %v2974_v29 = vpack.c.bf16 %v209_v28, %v208_v27  ;;  %v210_v30 = vld [vmem:[#allocation6 + $0x60] sm:$0xff]  ;;  %v211_v31 = vld [vmem:[#allocation6 + $0x68] sm:$0xff]  ;;  %v212_v33 = vld [vmem:[#allocation6 + $0x70] sm:$0xff]  ;;  %v3669_v11 = vand.u32 127, %v415_v9 }
  0x82   :  { %v2978_v32 = vpack.c.bf16 %v211_v31, %v210_v30  ;;  %v213_v34 = vld [vmem:[#allocation6 + $0x78] sm:$0xff]  ;;  %v147_v36 = vld [vmem:[#allocation4 + $0x8] sm:$0xff]  ;;  %v148_v37 = vld [vmem:[#allocation4 + $0x10] sm:$0xff]  ;;  %v2994_v13 = vpack.c.bf16 %v3637_v15, %v3631_v12 }
  0x83   :  { %2961 = vmatpush3.bf16.msra.mxu0 %v2958_v5  ;;  %v168_v24 = vadd.f32 %v167_v20, %v157_v17  ;;  %v2982_v35 = vpack.c.bf16 %v213_v34, %v212_v33  ;;  %v149_v38 = vld [vmem:[#allocation4 + $0x18] sm:$0xff]  ;;  %v3674_v17 = vadd.s32 8, %v3667_v10  ;;  %vm4094_vm1 = vcmp.ne.s32.totalorder %v3667_v10, %v3669_v11  ;;  %v2369_v33 = vld [vmem:[%s4082_s5] ss:$0 sm:$0xff] }
  0x84   :  { %2963 = vmatprep.subr.bf16.mxu0 %v2962_v8  ;;  %155 = vadd.xlane.f32.xlu0 %v154_v18  ;;  %v3679_v18 = vadd.s32 16, %v3667_v10  ;;  %v3000_v20 = vpack.c.bf16 %v3639_v16, %v3635_v14  ;;  %vm558_vm7 = vcmp.eq.s32.totalorder %v3667_v10, %v3669_v11  ;;  %vm4095_vm14 = vcmp.lt.s32.totalorder %v3667_v10, %v3669_v11 }
  0x85   :  { %161 = vadd.xlane.f32.xlu1 %v160_v23  ;;  %v169_v26 = vadd.f32 %v168_v24, %v160_v23  ;;  %vm4092_vm2 = vcmp.ne.s32.totalorder %v3674_v17, %v3669_v11  ;;  %vm559_vm8 = vcmp.eq.s32.totalorder %v3674_v17, %v3669_v11  ;;  %vm4093_vm13 = vcmp.lt.s32.totalorder %v3674_v17, %v3669_v11 }
  0x86   :  { %vm424_vm3 = vcmp.ne.s32.totalorder %v3679_v18, %v3669_v11  ;;  %vm3698_vm5 = vmpackc.low %vm4092_vm2, %vm4094_vm1  ;;  %vm560_vm10 = vcmp.eq.s32.totalorder %v3679_v18, %v3669_v11 }
  0x87   :  { %2965 = vmatpush3.bf16.msra.mxu0 %v2962_v8  ;;  %v170_v39 = vrot.slane %v169_v26, 4  ;;  %2996 = vmatprep.subr.msk.bf16.mxu1 %vm3698_vm5, %v2994_v13  ;;  %vm3781_vm9 = vmpackc.low %vm559_vm8, %vm558_vm7 }
  0x88   :  { %2967 = vmatprep.subr.bf16.mxu0 %v2966_v19  ;;  %2999 = vmatpush3.bf16.msk.msra.mxu1 %vm3698_vm5, %v2994_v13 }
  0x89   :  { %v171_v40 = vadd.f32 %v170_v39, %v169_v26 }
  0x8b   :  { %2969 = vmatpush3.bf16.msra.mxu0 %v2966_v19  ;;  %v172_v41 = vrot.slane %v171_v40, 2  ;;  %v3682_v19 = vadd.s32 24, %v3667_v10 }
  0x8c   :  { %2971 = vmatprep.subr.bf16.mxu0 %v2970_v25 }
  0x8d   :  { %v173_v42 = vadd.f32 %v172_v41, %v171_v40  ;;  %vm425_vm4 = vcmp.ne.s32.totalorder %v3682_v19, %v3669_v11  ;;  %vm561_vm11 = vcmp.eq.s32.totalorder %v3682_v19, %v3669_v11 }
  0x8e   :  { %vm3710_vm6 = vmpackc.low %vm425_vm4, %vm424_vm3 }
  0x8f   :  { %2973 = vmatpush3.bf16.msra.mxu0 %v2970_v25  ;;  %v174_v43 = vrot.slane %v173_v42, 1  ;;  %3002 = vmatprep.subr.msk.bf16.mxu1 %vm3710_vm6, %v3000_v20  ;;  %vm3013_vm12 = vmpackc.low %vm561_vm11, %vm560_vm10  ;;  %vm665_vm10 = vcmp.lt.s32.totalorder %v3682_v19, %v3669_v11  ;;  %vm664_vm11 = vcmp.lt.s32.totalorder %v3679_v18, %v3669_v11 }
  0x90   :  { %2975 = vmatprep.subr.bf16.mxu0 %v2974_v29  ;;  %3005 = vmatpush3.bf16.msk.msra.mxu1 %vm3710_vm6, %v3000_v20 }
  0x91   :  { %v175_v44 = vadd.f32 %v174_v43, %v173_v42  ;;  %v2378_v43 = vld [vmem:[%s4089_s12] ss:$0 sm:$0xff] }
  0x93   :  { %2977 = vmatpush3.bf16.msra.mxu0 %v2974_v29  ;;  %v176_v45 = vadd.f32 2.0, %v175_v44 }
  0x94   :  { %2979 = vmatprep.subr.bf16.mxu0 %v2978_v32 }
  0x95   :  { %3222 = vrsqrt.f32 %v176_v45 }
  0x97   :  { %2981 = vmatpush3.bf16.msra.mxu0 %v2978_v32 }
  0x98   :  { %2983 = vmatprep.subr.bf16.mxu0 %v2982_v35 }
  0x9b   :  { %2985 = vmatpush3.bf16.msra.mxu0 %v2982_v35 }
  0x9e   :  { %2648 = vmatmul.mubr.f32.vlgmr.msra.gmra.mrb[0].mxu0 %v147_v36 }
  0x9f   :  { %2650 = vmatprep.mubr.f32.mxu0 %v148_v37  ;;  %v3223_v48 = vpop.eup %3222 }
  0xa2   :  { %2651 = vmatmul.mubr.f32.gmra.mrb[2].mxu0 %v149_v38 }
 0x10d   :  { %v153_v46 = vpop.xlane.xlu0 %152 }
 0x10e   :  { %v163_v47 = vadd.f32 2.0, %v153_v46  ;;  %v159_v52 = vpop.xlane.xlu1 %158 }
 0x10f   :  { %v165_v55 = vadd.f32 2.0, %v159_v52 }
 0x110   :  { %3224 = vrsqrt.f32 %v163_v47 }
 0x111   :  { %v156_v53 = vpop.xlane.xlu0 %155 }
 0x112   :  { %v164_v54 = vadd.f32 2.0, %v156_v53  ;;  %v162_v56 = vpop.xlane.xlu1 %161 }
 0x113   :  { %v166_v57 = vadd.f32 2.0, %v162_v56 }
 0x114   :  { %3226 = vrsqrt.f32 %v164_v54 }
 0x115   :  { %3228 = vrsqrt.f32 %v165_v55 }
 0x116   :  { %3230 = vrsqrt.f32 %v166_v57 }
 0x11a   :  { %v3225_v49 = vpop.eup %3224 }
 0x11b   :  { %v182_v50 = vmul.f32 %v3225_v49, %v3631_v12  ;;  %v190_v24 = vmul.f32 2.0, %v3225_v49 }
 0x11d   :  { %v3648_v51 = vmul.f32 %v3223_v48, %v182_v50  ;;  %v3722_v27 = vmul.f32 %v3225_v49, %v190_v24 }
 0x11e   :  { %v3227_v61 = vpop.eup %3226 }
 0x11f   :  { %2661 = vmatprep.mubr.msk.f32.mxu0 %vm4098_vm0, %v3648_v51  ;;  %v3229_v62 = vpop.eup %3228  ;;  %v183_v0 = vmul.f32 %v3227_v61, %v3637_v15  ;;  %v191_v23 = vmul.f32 2.0, %v3227_v61 }
 0x120   :  { %v184_v2 = vmul.f32 %v3229_v62, %v3635_v14  ;;  %v3231_v4 = vpop.eup %3230  ;;  %v192_v28 = vmul.f32 2.0, %v3229_v62 }
 0x121   :  { %v3654_v5 = vmul.f32 %v3223_v48, %v183_v0  ;;  %v185_v6 = vmul.f32 %v3231_v4, %v3639_v16  ;;  %v3720_v25 = vmul.f32 %v3227_v61, %v191_v23  ;;  %v193_v26 = vmul.f32 2.0, %v3231_v4 }
 0x122   :  { %v3657_v7 = vmul.f32 %v3223_v48, %v184_v2  ;;  %v3728_v32 = vmul.f32 %v3229_v62, %v192_v28  ;;  %v3425_v61 = vmov 1.0  }
 0x123   :  { %v3661_v8 = vmul.f32 %v3223_v48, %v185_v6  ;;  %v3725_v30 = vmul.f32 %v3231_v4, %v193_v26 }
 0x171   :  { %v2649_v58 = vpop.f32.mrb[0].mxu0 }
 0x172   :  { %v281_v59 = vpop.f32.mrb[1].mxu0  ;;  %v301_v29 = vmul.f32 %v2649_v58, %v3720_v25 }
 0x173   :  { %v2986_v60 = vpack.c.bf16 %v2649_v58, %v281_v59  ;;  %v300_v31 = vmul.f32 %v281_v59, %v3722_v27  ;;  %v426_v58 = vsel %vm4094_vm1, %v3631_v12, 0.0  ;;  %v427_v59 = vsel %vm4092_vm2, %v3637_v15, 0.0 }
 0x174   :  { %2675 = vmatprep.mubr.msk.f32.mxu1 %vm4098_vm0, %v426_v58  ;;  %v429_v12 = vsel %vm425_vm4, %v3639_v16, 0.0  ;;  %v4107_v16 = vmov 0  ;;  %v431_v28 = vmul.f32 2.0, %v427_v59 }
 0x175   :  { %v2652_v63 = vpop.f32.mrb[2].mxu0  ;;  %2987 = vmatprep.subr.bf16.mxu0 %v2986_v60  ;;  %2676 = vmatmul.mubr.msk.f32.vlgmr.msra.gmra.mrb[0].mxu1 %vm4098_vm0, %v427_v59  ;;  %v4108_v16 = vsel %vm3781_vm9, 4294967295, %v4107_v16 }
 0x176   :  { %v291_v1 = vpop.f32.mrb[3].mxu0  ;;  %2989 = vmatpush3.bf16.msra.mxu0 %v2986_v60  ;;  %v303_v38 = vmul.f32 %v2652_v63, %v3725_v30  ;;  %v428_v60 = vsel %vm424_vm3, %v3635_v14, 0.0 }
 0x177   :  { %v2990_v3 = vpack.c.bf16 %v2652_v63, %v291_v1  ;;  %v302_v40 = vmul.f32 %v291_v1, %v3728_v32  ;;  %2678 = vmatprep.mubr.msk.f32.mxu1 %vm4098_vm0, %v428_v60 }
 0x179   :  { %2991 = vmatprep.subr.bf16.mxu0 %v2990_v3  ;;  %2679 = vmatmul.mubr.msk.f32.gmra.mrb[2].mxu1 %vm4098_vm0, %v429_v12 }
 0x17a   :  { %2993 = vmatpush3.bf16.msra.mxu0 %v2990_v3  ;;  %2689 = vmatprep.mubr.msk.f32.mxu1 %vm4098_vm0, %v3425_v61 }
 0x17d   :  { %2662 = vmatmul.mubr.msk.f32.vlgmr.msra.gmra.mrb[4].mxu0 %vm4098_vm0, %v3654_v5 }
 0x17e   :  { %2664 = vmatprep.mubr.msk.f32.mxu0 %vm4098_vm0, %v3657_v7 }
 0x181   :  { %2665 = vmatmul.mubr.msk.f32.gmra.mrb[6].mxu0 %vm4098_vm0, %v3661_v8 }
 0x250   :  { %v2663_v34 = vpop.f32.mrb[4].mxu0 }
 0x251   :  { %v388_v35 = vadd.f32 %v2663_v34, %v301_v29  ;;  %v382_v36 = vpop.f32.mrb[5].mxu0  ;;  %v430_v29 = vmul.f32 2.0, %v426_v58 }
 0x252   :  { %v383_v37 = vadd.f32 %v382_v36, %v300_v31  ;;  %v2677_v31 = vpop.f32.mrb[0].mxu1 }
 0x253   :  { %v408_v39 = vadd.f32 %v2369_v33, %v388_v35  ;;  %v512_v34 = vpop.f32.mrb[1].mxu1  ;;  %v433_v35 = vmul.f32 2.0, %v429_v12 }
 0x254   :  { %v407_v41 = vadd.f32 %v2369_v33, %v383_v37  ;;  %v2666_v42 = vpop.f32.mrb[6].mxu0  ;;  %v513_v36 = vadd.f32 %v512_v34, %v430_v29  ;;  %v432_v37 = vmul.f32 2.0, %v428_v60  ;;  %v992_v29 = vld [vmem:[#allocation7 + $0x28] sm:$0xff]  ;;  %v994_v34 = vld [vmem:[#allocation7 + $0x38] sm:$0xff] }
 0x255   :  { %v3738_v44 = vmax.f32 %v408_v39, 0.0  ;;  %v398_v45 = vadd.f32 %v2666_v42, %v303_v38  ;;  %v392_v46 = vpop.f32.mrb[7].mxu0  ;;  %v2680_v39 = vpop.f32.mrb[2].mxu1 }
 0x256   :  { %v3740_v47 = vmax.f32 %v407_v41, 0.0  ;;  %v393_v48 = vadd.f32 %v392_v46, %v302_v40  ;;  %v528_v40 = vadd.f32 %v2680_v39, %v433_v35  ;;  %v522_v41 = vpop.f32.mrb[3].mxu1  ;;  %v997_v39 = vld [vmem:[#allocation7 + $0x50] sm:$0xff] }
 0x257   :  { %v410_v49 = vadd.f32 %v2369_v33, %v398_v45  ;;  %v543_v50 = vmul.f32 %v2378_v43, %v3738_v44  ;;  %v523_v42 = vadd.f32 %v522_v41, %v432_v37  ;;  %v996_v37 = vld [vmem:[#allocation7 + $0x48] sm:$0xff] }
 0x258   :  { %v409_v52 = vadd.f32 %v2369_v33, %v393_v48  ;;  %v542_v53 = vmul.f32 %v2378_v43, %v3740_v47  ;;  %v518_v33 = vadd.f32 %v2677_v31, %v431_v28  ;;  %v991_v28 = vld [vmem:[#allocation7 + $0x20] sm:$0xff] }
 0x259   :  { %v3744_v54 = vmax.f32 %v410_v49, 0.0  ;;  %548 = vadd.xlane.f32.xlu1 %v543_v50  ;;  %v3426_v49 = vmov 0.0   ;;  %v3054_v31 = vpack.c.bf16 %v992_v29, %v991_v28 }
 0x25a   :  { %v3746_v55 = vmax.f32 %v409_v52, 0.0  ;;  %546 = vadd.xlane.f32.xlu0 %v542_v53  ;;  %v3026_v38 = vpack.c.bf16 %v518_v33, %v513_v36  ;;  %v993_v33 = vld [vmem:[#allocation7 + $0x30] sm:$0xff]  ;;  %v995_v36 = vld [vmem:[#allocation7 + $0x40] sm:$0xff] }
 0x25b   :  { %v545_v56 = vmul.f32 %v2378_v43, %v3744_v54  ;;  %v3058_v35 = vpack.c.bf16 %v994_v34, %v993_v33 }
 0x25c   :  { %v544_v57 = vmul.f32 %v2378_v43, %v3746_v55  ;;  %3028 = vmatprep.subr.msk.bf16.mxu0 %vm3698_vm5, %v3026_v38  ;;  %v3032_v43 = vpack.c.bf16 %v528_v40, %v523_v42  ;;  %v998_v40 = vld [vmem:[#allocation7 + $0x58] sm:$0xff]  ;;  %v999_v42 = vld [vmem:[#allocation7 + $0x60] sm:$0xff] }
 0x25d   :  { %552 = vadd.xlane.f32.xlu1 %v545_v56  ;;  %3031 = vmatpush3.bf16.msk.msra.mxu0 %vm3698_vm5, %v3026_v38  ;;  %v3062_v38 = vpack.c.bf16 %v996_v37, %v995_v36  ;;  %v3066_v41 = vpack.c.bf16 %v998_v40, %v997_v39 }
 0x25e   :  { %550 = vadd.xlane.f32.xlu0 %v544_v57  ;;  %3034 = vmatprep.subr.msk.bf16.mxu0 %vm3710_vm6, %v3032_v43 }
 0x261   :  { %3037 = vmatpush3.bf16.msk.msra.mxu0 %vm3710_vm6, %v3032_v43  ;;  %v1000_v43 = vld [vmem:[#allocation7 + $0x68] sm:$0xff] }
 0x2e6   :  { %v3776_v14 = vpop.xlane.xlu1 %548 }
 0x2e7   :  { %3232 = vtanh.f32 %v3776_v14  ;;  %v3779_v15 = vpop.xlane.xlu0 %546 }
 0x2e8   :  { %3234 = vtanh.f32 %v3779_v15  ;;  %v3006_v62 = vpack.c.bf16 %v3776_v14, %v3779_v15 }
 0x2ea   :  { %v3792_v63 = vpop.xlane.xlu1 %552  ;;  %3008 = vmatprep.subr.msk.bf16.mxu1 %vm3781_vm9, %v3006_v62 }
 0x2eb   :  { %3236 = vtanh.f32 %v3792_v63  ;;  %3011 = vmatpush3.bf16.msk.msra.mxu1 %vm3781_vm9, %v3006_v62  ;;  %v3799_v0 = vpop.xlane.xlu0 %550 }
 0x2ec   :  { %3238 = vtanh.f32 %v3799_v0  ;;  %v3012_v1 = vpack.c.bf16 %v3792_v63, %v3799_v0 }
 0x2ee   :  { %3014 = vmatprep.subr.msk.bf16.mxu1 %vm3013_vm12, %v3012_v1 }
 0x2ef   :  { %3017 = vmatpush3.bf16.msk.msra.mxu1 %vm3013_vm12, %v3012_v1 }
 0x2f1   :  { %v3233_v2 = vpop.eup %3232 }
 0x2f2   :  { %v3235_v3 = vpop.eup %3234  ;;  %2690 = vmatmul.mubr.msk.f32.vlgmr.msra.gmra.mrb[4].mxu1 %vm4098_vm0, %v3425_v61  ;;  %v719_v4 = vmul.f32 %v3233_v2, %v3738_v44  ;;  %v704_v2 = vcvt.s32.f32 %v3674_v17 }
 0x2f3   :  { %2692 = vmatprep.mubr.msk.f32.mxu1 %vm4098_vm0, %v3425_v61  ;;  %v718_v6 = vmul.f32 %v3235_v3, %v3740_v47 }
 0x2f5   :  { %v3237_v9 = vpop.eup %3236  ;;  %v3018_v13 = vpack.c.bf16 %v719_v4, %v718_v6 }
 0x2f6   :  { %v3239_v20 = vpop.eup %3238  ;;  %2693 = vmatmul.mubr.msk.f32.gmra.mrb[6].mxu1 %vm4098_vm0, %v3425_v61  ;;  %v721_v23 = vmul.f32 %v3237_v9, %v3744_v54  ;;  %v987_v9 = vld [vmem:[#allocation7] sm:$0xff] }
 0x2f7   :  { %3019 = vmatprep.subr.bf16.mxu1 %v3018_v13  ;;  %v720_v24 = vmul.f32 %v3239_v20, %v3746_v55  ;;  %v989_v20 = vld [vmem:[#allocation7 + $0x10] sm:$0xff] }
 0x2f8   :  { %3021 = vmatpush3.bf16.msra.mxu1 %v3018_v13  ;;  %v988_v13 = vld [vmem:[#allocation7 + $0x8] sm:$0xff] }
 0x2f9   :  { %v3022_v26 = vpack.c.bf16 %v721_v23, %v720_v24  ;;  %v3046_v23 = vpack.c.bf16 %v988_v13, %v987_v9  ;;  %v990_v24 = vld [vmem:[#allocation7 + $0x18] sm:$0xff] }
 0x2fb   :  { %3023 = vmatprep.subr.bf16.mxu1 %v3022_v26  ;;  %3047 = vmatprep.subr.bf16.mxu0 %v3046_v23 }
 0x2fc   :  { %3025 = vmatpush3.bf16.msra.mxu1 %v3022_v26  ;;  %v3050_v26 = vpack.c.bf16 %v990_v24, %v989_v20 }
 0x3c5   :  { %v2691_v45 = vpop.f32.mrb[4].mxu1 }
 0x3c6   :  { %vm655_vm15 = vcmp.gt.f32.partialorder %v3776_v14, %v2691_v45  ;;  %vm659_vm3 = vcmp.eq.f32.partialorder %v3776_v14, %v2691_v45  ;;  %v635_v46 = vpop.f32.mrb[5].mxu1  ;;  %v3070_v45 = vpack.c.bf16 %v1000_v43, %v999_v42 }
 0x3c7   :  { %vm667_vm4 = vmand %vm659_vm3, %vm4093_vm13  ;;  %vm654_vm7 = vcmp.gt.f32.partialorder %v3779_v15, %v635_v46  ;;  %vm658_vm6 = vcmp.eq.f32.partialorder %v3779_v15, %v635_v46  ;;  %v1001_v46 = vld [vmem:[#allocation7 + $0x70] sm:$0xff] }
 0x3c8   :  { %vm666_vm8 = vmand %vm658_vm6, %vm4095_vm14 }
 0x3c9   :  { %v2694_v22 = vpop.f32.mrb[6].mxu1  ;;  %vm671_vm12 = vmor %vm655_vm15, %vm667_vm4 }
 0x3ca   :  { %vm657_vm2 = vcmp.gt.f32.partialorder %v3792_v63, %v2694_v22  ;;  %vm661_vm3 = vcmp.eq.f32.partialorder %v3792_v63, %v2694_v22  ;;  %v645_v48 = vpop.f32.mrb[7].mxu1  ;;  %v675_v50 = vsel %vm671_vm12, 1.0, %v3426_v49  ;;  %vm670_vm13 = vmor %vm654_vm7, %vm666_vm8  ;;  %v703_v63 = vcvt.s32.f32 %v3667_v10  ;;  %v1002_v22 = vld [vmem:[#allocation7 + $0x78] sm:$0xff] }
 0x3cb   :  { %vm669_vm1 = vmand %vm661_vm3, %vm665_vm10  ;;  %vm656_vm6 = vcmp.gt.f32.partialorder %v3799_v0, %v645_v48  ;;  %vm660_vm14 = vcmp.eq.f32.partialorder %v3799_v0, %v645_v48  ;;  %v679_v19 = vsel %vm4098_vm0, %v675_v50, 0.0  ;;  %v674_v52 = vsel %vm670_vm13, 1.0, %v3426_v49 }
 0x3cc   :  { %vm668_vm9 = vmand %vm660_vm14, %vm664_vm11  ;;  %693 = vadd.xlane.f32.xlu1 %v679_v19  ;;  %v678_v18 = vsel %vm4098_vm0, %v674_v52, 0.0  ;;  %v3074_v48 = vpack.c.bf16 %v1002_v22, %v1001_v46  ;;  %v3866_v50 = vcvt.s32.f32 %v3669_v11  ;;  %vm4099_vm11 = vcmask 130048  }
 0x3cd   :  { %691 = vadd.xlane.f32.xlu0 %v678_v18  ;;  %v680_v53 = vadd.f32 %v679_v19, %v678_v18  ;;  %vm673_vm15 = vmor %vm657_vm2, %vm669_vm1  ;;  %vm4117_vm12 = vcmp.ne.s32.totalorder %v3667_v10, %v3669_v11  ;;  %vm4118_vm3 = vcmp.ne.s32.totalorder %v3674_v17, %v3669_v11 }
 0x3ce   :  { %v677_v56 = vsel %vm673_vm15, 1.0, %v3426_v49  ;;  %vm672_vm4 = vmor %vm656_vm6, %vm668_vm9  ;;  %vm4119_vm6 = vnez %v4108_v16  ;;  %vm4101_vm15 = vmmov 0  }
 0x3cf   :  { %v683_v57 = vsel %vm4098_vm0, %v677_v56, 0.0  ;;  %v676_v58 = vsel %vm672_vm4, 1.0, %v3426_v49  ;;  %v2159_v56 = vld [vmem:[#allocation12 + $0x38] sm:$0xff] }
 0x3d0   :  { %697 = vadd.xlane.f32.xlu1 %v683_v57  ;;  %v681_v59 = vsel %vm4098_vm0, %v676_v58, 0.0 }
 0x3d1   :  { %695 = vadd.xlane.f32.xlu0 %v681_v59  ;;  %v682_v60 = vadd.f32 %v681_v59, %v680_v53 }
 0x3d3   :  { %v684_v12 = vadd.f32 %v683_v57, %v682_v60  ;;  %v2153_v57 = vld [vmem:[#allocation12 + $0x8] sm:$0xff] }
 0x3d5   :  { %v685_v14 = vrot.slane %v684_v12, 4 }
 0x3d7   :  { %v686_v15 = vadd.f32 %v685_v14, %v684_v12  ;;  %v3427_v14 = vmov 1.0|1.0  }
 0x3d9   :  { %v687_v62 = vrot.slane %v686_v15, 2 }
 0x3db   :  { %v688_v0 = vadd.f32 %v687_v62, %v686_v15  ;;  %v4113_v15 = vmov 0 }
 0x3dd   :  { %v689_v1 = vrot.slane %v688_v0, 1 }
 0x3df   :  { %v690_v3 = vadd.f32 %v689_v1, %v688_v0 }
 0x3e1   :  { %vm706_vm1 = vcmp.eq.f32.partialorder %v703_v63, %v690_v3  ;;  %vm707_vm2 = vcmp.eq.f32.partialorder %v704_v2, %v690_v3 }
 0x3e2   :  { %v708_v4 = vsel %vm706_vm1, 1.0, %v3426_v49  ;;  %v709_v6 = vsel %vm707_vm2, 1.0, %v3426_v49  ;;  %vm4120_vm2 = vcmp.lt.s32.totalorder %v3674_v17, %v3669_v11 }
 0x3e3   :  { %2703 = vmatprep.mubr.msk.f32.mxu1 %vm4098_vm0, %v708_v4  ;;  %2714 = vmatprep.mubr.msk.f32.mxu0 %vm4098_vm0, %v708_v4 }
 0x3e4   :  { %2704 = vmatmul.mubr.msk.f32.vlgmr.msra.gmra.mrb[8].mxu1 %vm4098_vm0, %v709_v6  ;;  %2715 = vmatmul.mubr.msk.f32.vlgmr.msra.gmra.mrb[8].mxu0 %vm4098_vm0, %v709_v6 }
 0x3e5   :  { %3049 = vmatpush3.bf16.msra.mxu0 %v3046_v23 }
 0x3e6   :  { %3051 = vmatprep.subr.bf16.mxu0 %v3050_v26 }
 0x3e9   :  { %3053 = vmatpush3.bf16.msra.mxu0 %v3050_v26 }
 0x3ea   :  { %3055 = vmatprep.subr.bf16.mxu0 %v3054_v31 }
 0x3ed   :  { %3057 = vmatpush3.bf16.msra.mxu0 %v3054_v31 }
 0x3ee   :  { %3059 = vmatprep.subr.bf16.mxu0 %v3058_v35 }
 0x3f1   :  { %3061 = vmatpush3.bf16.msra.mxu0 %v3058_v35 }
 0x3f2   :  { %3063 = vmatprep.subr.bf16.mxu0 %v3062_v38 }
 0x3f5   :  { %3065 = vmatpush3.bf16.msra.mxu0 %v3062_v38 }
 0x3f6   :  { %3067 = vmatprep.subr.bf16.mxu0 %v3066_v41 }
 0x3f9   :  { %3069 = vmatpush3.bf16.msra.mxu0 %v3066_v41 }
 0x3fa   :  { %3071 = vmatprep.subr.bf16.mxu0 %v3070_v45 }
 0x3fd   :  { %3073 = vmatpush3.bf16.msra.mxu0 %v3070_v45 }
 0x3fe   :  { %3075 = vmatprep.subr.bf16.mxu0 %v3074_v48 }
 0x401   :  { %3077 = vmatpush3.bf16.msra.mxu0 %v3074_v48 }
 0x402   :  { %2840 = vmatprep.subr.mxu0 %v3426_v49 }
 0x459   :  { %v694_v19 = vpop.xlane.xlu1 %693 }
 0x45a   :  { %v700_v52 = vsub.f32 31.0, %v694_v19  ;;  %v692_v18 = vpop.xlane.xlu0 %691 }
 0x45b   :  { %v699_v53 = vsub.f32 31.0, %v692_v18 }
 0x45c   :  { %vm3869_vm9 = vcmp.eq.f32.partialorder %v3866_v50, %v700_v52 }
 0x45d   :  { %vm3874_vm13 = vcmp.eq.f32.partialorder %v3866_v50, %v699_v53  ;;  %v698_v58 = vpop.xlane.xlu1 %697 }
 0x45e   :  { %v702_v59 = vsub.f32 31.0, %v698_v58  ;;  %v696_v60 = vpop.xlane.xlu0 %695  ;;  %vm3038_vm14 = vmpackc.low %vm3869_vm9, %vm3874_vm13 }
 0x45f   :  { %v701_v12 = vsub.f32 31.0, %v696_v60  ;;  %3039 = vmatprep.subr.msk.bf16.mxu1 %vm3038_vm14, %v3427_v14 }
 0x460   :  { %vm3884_vm7 = vcmp.eq.f32.partialorder %v3866_v50, %v702_v59  ;;  %3041 = vmatpush3.bf16.msk.msra.mxu1 %vm3038_vm14, %v3427_v14 }
 0x461   :  { %v4114_v15 = vsel %vm3884_vm7, 4294967295, %v4113_v15  ;;  %vm3890_vm8 = vcmp.eq.f32.partialorder %v3866_v50, %v701_v12 }
 0x462   :  { %vm3042_vm10 = vmpackc.low %vm3884_vm7, %vm3890_vm8  ;;  %vm4122_vm7 = vcmask 130048  }
 0x463   :  { %3043 = vmatprep.subr.msk.bf16.mxu1 %vm3042_vm10, %v3427_v14 }
 0x464   :  { %3045 = vmatpush3.bf16.msk.msra.mxu1 %vm3042_vm10, %v3427_v14 }
 0x4b7   :  { %v2705_v0 = vpop.f32.mrb[8].mxu1  ;;  %v2716_v1 = vpop.f32.mrb[8].mxu0 }
 0x4b8   :  { %v794_v2 = vpop.f32.mrb[9].mxu1  ;;  %v869_v3 = vpop.f32.mrb[9].mxu0 }
 0x4b9   :  { %2725 = vmatprep.mubr.msk.f32.mxu1 %vm4098_vm0, %v869_v3  ;;  %2760 = vmatprep.mubr.f32.mxu0 %v794_v2 }
 0x4ba   :  { %2726 = vmatmul.mubr.msk.f32.vlgmr.msra.gmra.mrb[10].mxu1 %vm4098_vm0, %v2716_v1  ;;  %2761 = vmatmul.mubr.f32.vlgmr.msra.gmra.mrb[10].mxu0 %v2705_v0  ;;  %v2403_v0 = vld [vmem:[%s4083_s6] ss:$0 sm:$0xff] }
 0x4bb   :  { %2842 = vmatprep.mubr.msk.f32.mxu0 %vm4101_vm15, %v3426_v49 }
 0x58d   :  { %v2727_v4 = vpop.f32.mrb[10].mxu1  ;;  %v2762_v6 = vpop.f32.mrb[10].mxu0 }
 0x58e   :  { %v950_v9 = vpop.f32.mrb[11].mxu1  ;;  %v1070_v13 = vpop.f32.mrb[11].mxu0  ;;  %v963_v20 = vsel %vm4099_vm11, %v2727_v4, 0.0  ;;  %v1173_v18 = vsel %vm4118_vm3, %v2727_v4, 0.0  ;;  %vm4121_vm3 = vcmp.lt.s32.totalorder %v3667_v10, %v3669_v11 }
 0x58f   :  { %v3082_v23 = vpack.c.bf16 %v2727_v4, %v950_v9  ;;  %v3078_v24 = vpack.c.bf16 %v2762_v6, %v1070_v13  ;;  %964 = vadd.xlane.f32.xlu1 %v963_v20  ;;  %v960_v26 = vsel %vm4099_vm11, %v950_v9, 0.0  ;;  %v1172_v52 = vsel %vm4117_vm12, %v950_v9, 0.0 }
 0x590   :  { %961 = vadd.xlane.f32.xlu0 %v960_v26  ;;  %v968_v28 = vadd.f32 %v963_v20, %v960_v26 }
 0x591   :  { %3079 = vmatprep.subr.bf16.mxu1 %v3078_v24 }
 0x592   :  { %3081 = vmatpush3.bf16.msra.mxu1 %v3078_v24  ;;  %v969_v29 = vrot.slane %v968_v28, 4 }
 0x593   :  { %3084 = vmatprep.subr.msk.bf16.mxu1 %vm3698_vm5, %v3082_v23 }
 0x594   :  { %v970_v31 = vadd.f32 %v969_v29, %v968_v28  ;;  %v1174_v28 = vmul.f32 2.0, %v1172_v52  ;;  %v2408_v29 = vld [vmem:[%s4090_s13] ss:$0 sm:$0xff] }
 0x596   :  { %v971_v33 = vrot.slane %v970_v31, 2 }
 0x598   :  { %v972_v34 = vadd.f32 %v971_v33, %v970_v31 }
 0x59a   :  { %v973_v35 = vrot.slane %v972_v34, 1 }
 0x59c   :  { %v974_v36 = vadd.f32 %v973_v35, %v972_v34 }
 0x59e   :  { %v975_v38 = vadd.f32 2.0, %v974_v36 }
 0x61c   :  { %v965_v37 = vpop.xlane.xlu1 %964 }
 0x61d   :  { %v967_v39 = vadd.f32 2.0, %v965_v37  ;;  %v962_v40 = vpop.xlane.xlu0 %961 }
 0x61e   :  { %v966_v41 = vadd.f32 2.0, %v962_v40 }
 0x61f   :  { %3240 = vrsqrt.f32 %v967_v39 }
 0x620   :  { %3242 = vrsqrt.f32 %v966_v41  ;;  %v3428_v41 = vmov 0.0|0.0  }
 0x621   :  { %3244 = vrsqrt.f32 %v975_v38 }
 0x629   :  { %v3241_v42 = vpop.eup %3240 }
 0x62a   :  { %v3243_v43 = vpop.eup %3242  ;;  %v980_v45 = vmul.f32 %v3241_v42, %v2727_v4  ;;  %v984_v53 = vmul.f32 2.0, %v3241_v42 }
 0x62b   :  { %v3245_v46 = vpop.eup %3244  ;;  %v979_v22 = vmul.f32 %v3243_v43, %v950_v9  ;;  %v983_v58 = vmul.f32 2.0, %v3243_v43 }
 0x62c   :  { %v3906_v48 = vmul.f32 %v3245_v46, %v980_v45  ;;  %v3926_v59 = vmul.f32 %v3241_v42, %v984_v53 }
 0x62d   :  { %v3908_v19 = vmul.f32 %v3245_v46, %v979_v22  ;;  %v3928_v60 = vmul.f32 %v3243_v43, %v983_v58 }
 0x62e   :  { %v1080_v12 = vmul.f32 %v2762_v6, %v3926_v59 }
 0x62f   :  { %2767 = vmatprep.mubr.msk.f32.mxu1 %vm4099_vm11, %v3908_v19  ;;  %v1079_v2 = vmul.f32 %v1070_v13, %v3928_v60 }
 0x630   :  { %2768 = vmatmul.mubr.msk.f32.vlgmr.msra.gmra.mrb[12].mxu1 %vm4099_vm11, %v3906_v48 }
 0x631   :  { %3087 = vmatpush3.bf16.msk.msra.mxu1 %vm3698_vm5, %v3082_v23  ;;  %2774 = vmatprep.mubr.msk.f32.mxu1 %vm4099_vm11, %v1172_v52  ;;  %v1175_v23 = vmul.f32 2.0, %v1173_v18 }
 0x634   :  { %2775 = vmatmul.mubr.msk.f32.vlgmr.msra.gmra.mrb[14].mxu1 %vm4099_vm11, %v1173_v18 }
 0x635   :  { %2781 = vmatprep.mubr.msk.f32.mxu1 %vm4099_vm11, %v3425_v61 }
 0x703   :  { %v2769_v1 = vpop.f32.mrb[12].mxu1 }
 0x704   :  { %v1159_v3 = vadd.f32 %v2769_v1, %v1080_v12  ;;  %v1153_v4 = vpop.f32.mrb[13].mxu1 }
 0x705   :  { %v1154_v9 = vadd.f32 %v1153_v4, %v1079_v2 }
 0x706   :  { %v1169_v20 = vadd.f32 %v2403_v0, %v1159_v3 }
 0x707   :  { %v1168_v24 = vadd.f32 %v2403_v0, %v1154_v9  ;;  %v2776_v26 = vpop.f32.mrb[14].mxu1 }
 0x708   :  { %v3938_v6 = vmax.f32 %v1169_v20, 0.0  ;;  %v1254_v31 = vadd.f32 %v2776_v26, %v1175_v23  ;;  %v1248_v33 = vpop.f32.mrb[15].mxu1  ;;  %v1621_v26 = vld [vmem:[#allocation9 + $0x8] sm:$0xff] }
 0x709   :  { %v3940_v34 = vmax.f32 %v1168_v24, 0.0  ;;  %v1249_v35 = vadd.f32 %v1248_v33, %v1174_v28  ;;  %v1620_v24 = vld [vmem:[#allocation9] sm:$0xff]  ;;  %v1622_v33 = vld [vmem:[#allocation9 + $0x10] sm:$0xff] }
 0x70a   :  { %v1267_v13 = vmul.f32 %v2408_v29, %v3938_v6 }
 0x70b   :  { %v3098_v36 = vpack.c.bf16 %v1254_v31, %v1249_v35  ;;  %v1266_v37 = vmul.f32 %v2408_v29, %v3940_v34  ;;  %v3105_v31 = vpack.c.bf16 %v1621_v26, %v1620_v24  ;;  %v1623_v35 = vld [vmem:[#allocation9 + $0x18] sm:$0xff] }
 0x70c   :  { %1270 = vadd.xlane.f32.xlu1 %v1267_v13 }
 0x70d   :  { %1268 = vadd.xlane.f32.xlu0 %v1266_v37  ;;  %v1625_v37 = vld [vmem:[#allocation9 + $0x28] sm:$0xff] }
 0x799   :  { %v1271_v38 = vpop.xlane.xlu1 %1270 }
 0x79a   :  { %3246 = vtanh.f32 %v1271_v38  ;;  %v1269_v39 = vpop.xlane.xlu0 %1268 }
 0x79b   :  { %3248 = vtanh.f32 %v1269_v39  ;;  %v3088_v40 = vpack.c.bf16 %v1271_v38, %v1269_v39 }
 0x79d   :  { %3090 = vmatprep.subr.msk.bf16.mxu1 %vm4119_vm6, %v3088_v40 }
 0x79e   :  { %3093 = vmatpush3.bf16.msk.msra.mxu1 %vm4119_vm6, %v3088_v40  ;;  %v1627_v40 = vld [vmem:[#allocation9 + $0x38] sm:$0xff] }
 0x79f   :  { %3094 = vmatprep.subr.bf16.mxu1 %v3428_v41 }
 0x7a1   :  { %2782 = vmatmul.mubr.msk.f32.vlgmr.msra.gmra.mrb[16].mxu1 %vm4099_vm11, %v3425_v61 }
 0x7a2   :  { %2788 = vmatprep.mubr.msk.f32.mxu1 %vm4101_vm15, %v3426_v49  ;;  %vm4123_vm15 = vmmov %vm4122_vm7 }
 0x7a4   :  { %v3247_v42 = vpop.eup %3246 }
 0x7a5   :  { %v3249_v43 = vpop.eup %3248  ;;  %v1385_v45 = vmul.f32 %v3247_v42, %v3938_v6 }
 0x7a6   :  { %v1384_v46 = vmul.f32 %v3249_v43, %v3940_v34  ;;  %v1628_v43 = vld [vmem:[#allocation9 + $0x40] sm:$0xff] }
 0x7a8   :  { %v3095_v22 = vpack.c.bf16 %v1385_v45, %v1384_v46  ;;  %v1629_v45 = vld [vmem:[#allocation9 + $0x48] sm:$0xff] }
 0x7a9   :  { %v3117_v46 = vpack.c.bf16 %v1629_v45, %v1628_v43  ;;  %v1874_v45 = vld [vmem:[#allocation10 + $0x10] sm:$0xff] }
 0x7aa   :  { %3096 = vmatpush3.bf16.msra.mxu1 %v3095_v22  ;;  %v1630_v22 = vld [vmem:[#allocation9 + $0x50] sm:$0xff] }
 0x7ab   :  { %3097 = vmatprep.subr.bf16.mxu1 %v3428_v41 }
 0x874   :  { %v2783_v16 = vpop.f32.mrb[16].mxu1 }
 0x875   :  { %vm1354_vm4 = vcmp.gt.f32.partialorder %v1271_v38, %v2783_v16  ;;  %vm1356_vm1 = vcmp.eq.f32.partialorder %v1271_v38, %v2783_v16  ;;  %v1344_v61 = vpop.f32.mrb[17].mxu1  ;;  %v1631_v16 = vld [vmem:[#allocation9 + $0x58] sm:$0xff] }
 0x876   :  { %vm1358_vm14 = vmand %vm1356_vm1, %vm4120_vm2  ;;  %vm1353_vm10 = vcmp.gt.f32.partialorder %v1269_v39, %v1344_v61  ;;  %vm1355_vm12 = vcmp.eq.f32.partialorder %v1269_v39, %v1344_v61  ;;  %v1626_v39 = vld [vmem:[#allocation9 + $0x30] sm:$0xff]  ;;  %v3120_v61 = vpack.c.bf16 %v1631_v16, %v1630_v22 }
 0x877   :  { %vm1357_vm6 = vmand %vm1355_vm12, %vm4121_vm3  ;;  %v3114_v42 = vpack.c.bf16 %v1627_v40, %v1626_v39  ;;  %v1872_v40 = vld [vmem:[#allocation10] sm:$0xff]  ;;  %vm4133_vm12 = vcmask 261120  }
 0x878   :  { %vm1360_vm0 = vmor %vm1354_vm4, %vm1358_vm14 }
 0x879   :  { %v1362_v52 = vsel %vm1360_vm0, 1.0, %v3426_v49  ;;  %vm1359_vm11 = vmor %vm1353_vm10, %vm1357_vm6  ;;  %vm1602_vm10 = vcmask 64512  }
 0x87a   :  { %v1364_v18 = vsel %vm4122_vm7, %v1362_v52, 0.0  ;;  %v1361_v53 = vsel %vm1359_vm11, 1.0, %v3426_v49  ;;  %vm4124_vm0 = vmmov %vm4122_vm7  ;;  %vm4125_vm7 = vmmov 0   ;;  %v1632_v52 = vld [vmem:[#allocation9 + $0x60] sm:$0xff] }
 0x87b   :  { %1374 = vadd.xlane.f32.xlu1 %v1364_v18  ;;  %v1363_v58 = vsel %vm4123_vm15, %v1361_v53, 0.0  ;;  %vm4126_vm11 = vmmov %vm4124_vm0 }
 0x87c   :  { %1372 = vadd.xlane.f32.xlu0 %v1363_v58  ;;  %v1365_v17 = vadd.f32 %v1364_v18, %v1363_v58  ;;  %vm4131_vm2 = vmmov %vm4124_vm0  ;;  %v1633_v18 = vld [vmem:[#allocation9 + $0x68] sm:$0xff]  ;;  %v1634_v58 = vld [vmem:[#allocation9 + $0x70] sm:$0xff] }
 0x87d   :  { %v3123_v53 = vpack.c.bf16 %v1633_v18, %v1632_v52  ;;  %vm4132_vm14 = vmmov %vm4124_vm0  ;;  %v1876_v52 = vld [vmem:[#allocation10 + $0x20] sm:$0xff]  ;;  %v1877_v18 = vld [vmem:[#allocation10 + $0x28] sm:$0xff] }
 0x87e   :  { %v1366_v12 = vrot.slane %v1365_v17, 4  ;;  %vm4134_vm3 = vmmov %vm4124_vm0 }
 0x87f   :  { %vm4135_vm6 = vmmov %vm4124_vm0 }
 0x880   :  { %v1367_v0 = vadd.f32 %v1366_v12, %v1365_v17  ;;  %v1635_v17 = vld [vmem:[#allocation9 + $0x78] sm:$0xff] }
 0x881   :  { %v3126_v12 = vpack.c.bf16 %v1635_v17, %v1634_v58  ;;  %v1878_v58 = vld [vmem:[#allocation10 + $0x30] sm:$0xff]  ;;  %v1879_v17 = vld [vmem:[#allocation10 + $0x38] sm:$0xff] }
 0x882   :  { %v1368_v1 = vrot.slane %v1367_v0, 2 }
 0x884   :  { %v1369_v2 = vadd.f32 %v1368_v1, %v1367_v0 }
 0x886   :  { %v1370_v3 = vrot.slane %v1369_v2, 1 }
 0x888   :  { %v1371_v11 = vadd.f32 %v1370_v3, %v1369_v2 }
 0x88a   :  { %vm1378_vm4 = vcmp.eq.f32.partialorder %v703_v63, %v1371_v11 }
 0x88b   :  { %v1379_v4 = vsel %vm1378_vm4, 1.0, %v3426_v49  ;;  %vm4137_vm4 = vmmov %vm4124_vm0 }
 0x88c   :  { %2789 = vmatmul.mubr.msk.f32.vlgmr.msra.gmra.mrb[18].mxu1 %vm4124_vm0, %v1379_v4 }
 0x88d   :  { %3100 = vmatpush3.bf16.msk.msra.mxu1 %vm3698_vm5, %v3098_v36  ;;  %2795 = vmatprep.mubr.msk.f32.mxu1 %vm4125_vm7, %v3426_v49  ;;  %v3108_v36 = vpack.c.bf16 %v1623_v35, %v1622_v33 }
 0x88e   :  { %3101 = vmatprep.subr.bf16.mxu1 %v3428_v41 }
 0x890   :  { %2796 = vmatmul.mubr.msk.f32.vlgmr.msra.gmra.mrb[20].mxu1 %vm4126_vm11, %v1379_v4 }
 0x891   :  { %2802 = vmatprep.mubr.msk.f32.mxu1 %vm4125_vm7, %v3426_v49 }
 0x908   :  { %v1375_v9 = vpop.xlane.xlu1 %1374 }
 0x909   :  { %v1377_v10 = vsub.f32 15.0, %v1375_v9  ;;  %v1373_v63 = vpop.xlane.xlu0 %1372 }
 0x90a   :  { %v1376_v20 = vsub.f32 15.0, %v1373_v63 }
 0x90b   :  { %vm3981_vm15 = vcmp.eq.f32.partialorder %v3866_v50, %v1377_v10 }
 0x90c   :  { %vm3986_vm5 = vcmp.eq.f32.partialorder %v3866_v50, %v1376_v20 }
 0x90d   :  { %vm3102_vm1 = vmpackc.low %vm3981_vm15, %vm3986_vm5 }
 0x90e   :  { %3103 = vmatpush3.bf16.msk.msra.mxu1 %vm3102_vm1, %v3427_v14  ;;  %v1624_v14 = vld [vmem:[#allocation9 + $0x20] sm:$0xff] }
 0x90f   :  { %3104 = vmatprep.subr.bf16.mxu1 %v3428_v41  ;;  %v3111_v38 = vpack.c.bf16 %v1625_v37, %v1624_v14  ;;  %v2421_v14 = vld [vmem:[%s4084_s7] ss:$0 sm:$0xff] }
 0x95f   :  { %v1455_v28 = vpop.f32.mrb[18].mxu1 }
 0x960   :  { %v2790_v29 = vpop.f32.mrb[19].mxu1 }
 0x963   :  { %v1525_v50 = vpop.f32.mrb[20].mxu1 }
 0x964   :  { %v2797_v13 = vpop.f32.mrb[21].mxu1  ;;  %2803 = vmatmul.mubr.msk.f32.vlgmr.msra.gmra.mrb[22].mxu1 %vm4131_vm2, %v1525_v50 }
 0x965   :  { %3106 = vmatpush3.bf16.msra.mxu1 %v3105_v31  ;;  %2837 = vmatprep.mubr.msk.f32.mxu1 %vm4125_vm7, %v3426_v49  ;;  %v1382_v13 = vsel %vm3986_vm5, 1.0, %v3426_v49 }
 0x966   :  { %3107 = vmatprep.subr.bf16.mxu1 %v3428_v41 }
 0x969   :  { %3109 = vmatpush3.bf16.msra.mxu1 %v3108_v36 }
 0x96a   :  { %3110 = vmatprep.subr.bf16.mxu1 %v3428_v41 }
 0x96d   :  { %3112 = vmatpush3.bf16.msra.mxu1 %v3111_v38 }
 0x96e   :  { %3113 = vmatprep.subr.bf16.mxu1 %v3428_v41 }
 0x971   :  { %3115 = vmatpush3.bf16.msra.mxu1 %v3114_v42  ;;  %v1873_v42 = vld [vmem:[#allocation10 + $0x8] sm:$0xff] }
 0x972   :  { %3116 = vmatprep.subr.bf16.mxu1 %v3428_v41  ;;  %v3128_v16 = vpack.c.bf16 %v1873_v42, %v1872_v40 }
 0x975   :  { %3118 = vmatpush3.bf16.msra.mxu1 %v3117_v46  ;;  %v1875_v46 = vld [vmem:[#allocation10 + $0x18] sm:$0xff] }
 0x976   :  { %3119 = vmatprep.subr.bf16.mxu1 %v3428_v41  ;;  %v3132_v21 = vpack.c.bf16 %v1875_v46, %v1874_v45  ;;  %v2154_v45 = vld [vmem:[#allocation12 + $0x10] sm:$0xff]  ;;  %v715_v46 = vsel %vm3869_vm9, 1.0, %v3426_v49  ;;  %vm4139_vm9 = vmmov %vm4131_vm2 }
 0x979   :  { %3121 = vmatpush3.bf16.msra.mxu1 %v3120_v61  ;;  %v1383_v61 = vsel %vm3981_vm15, 1.0, %v3426_v49 }
 0x97a   :  { %3122 = vmatprep.subr.bf16.mxu1 %v3428_v41 }
 0x97d   :  { %3124 = vmatpush3.bf16.msra.mxu1 %v3123_v53  ;;  %v3136_v53 = vpack.c.bf16 %v1877_v18, %v1876_v52  ;;  %v2158_v18 = vld [vmem:[#allocation12 + $0x30] sm:$0xff] }
 0x97e   :  { %3125 = vmatprep.subr.bf16.mxu1 %v3428_v41 }
 0x981   :  { %3127 = vmatpush3.bf16.msra.mxu1 %v3126_v12  ;;  %v3140_v12 = vpack.c.bf16 %v1879_v17, %v1878_v58  ;;  %v2160_v58 = vld [vmem:[#allocation12 + $0x40] sm:$0xff]  ;;  %v2161_v17 = vld [vmem:[#allocation12 + $0x48] sm:$0xff] }
 0x982   :  { %v3184_v62 = vpack.c.bf16 %v2161_v17, %v2160_v58 }
 0x984   :  { %2838 = vmatmul.mubr.f32.vlgmr.msra.gmra.mrb[24].mxu1 %v1455_v28 }
 0x985   :  { %2889 = vmatprep.mubr.msk.f32.mxu1 %vm4132_vm14, %v3908_v19 }
 0xa37   :  { %v1598_v0 = vpop.f32.mrb[22].mxu1 }
 0xa38   :  { %v2804_v1 = vpop.f32.mrb[23].mxu1  ;;  %v1603_v2 = vsel %vm1602_vm10, %v1598_v0, 0.0 }
 0xa39   :  { %1604 = vadd.xlane.f32.xlu0 %v1603_v2  ;;  %v1607_v4 = vrot.slane %v1603_v2, 4  ;;  %v1881_v1 = vld [vmem:[#allocation10 + $0x48] sm:$0xff] }
 0xa3b   :  { %v1608_v9 = vadd.f32 %v1607_v4, %v1603_v2  ;;  %v1882_v2 = vld [vmem:[#allocation10 + $0x50] sm:$0xff]  ;;  %v1884_v4 = vld [vmem:[#allocation10 + $0x60] sm:$0xff] }
 0xa3d   :  { %v1609_v10 = vrot.slane %v1608_v9, 2 }
 0xa3f   :  { %v1610_v63 = vadd.f32 %v1609_v10, %v1608_v9  ;;  %v1885_v9 = vld [vmem:[#allocation10 + $0x68] sm:$0xff] }
 0xa40   :  { %v3152_v10 = vpack.c.bf16 %v1885_v9, %v1884_v4 }
 0xa41   :  { %v1611_v20 = vrot.slane %v1610_v63, 1 }
 0xa43   :  { %v1612_v41 = vadd.f32 %v1611_v20, %v1610_v63  ;;  %v1886_v63 = vld [vmem:[#allocation10 + $0x70] sm:$0xff]  ;;  %v1887_v20 = vld [vmem:[#allocation10 + $0x78] sm:$0xff] }
 0xa45   :  { %v1613_v26 = vadd.f32 2.0, %v1612_v41  ;;  %v3156_v41 = vpack.c.bf16 %v1887_v20, %v1886_v63 }
 0xa57   :  { %v1703_v3 = vpop.f32.mrb[24].mxu1 }
 0xa58   :  { %v2839_v11 = vpop.f32.mrb[25].mxu1  ;;  %2841 = vmatpush3.msra.mxu0 %v1703_v3 }
 0xac6   :  { %v1605_v24 = vpop.xlane.xlu0 %1604 }
 0xac7   :  { %v1606_v28 = vadd.f32 2.0, %v1605_v24 }
 0xac9   :  { %3250 = vrsqrt.f32 %v1606_v28 }
 0xaca   :  { %3252 = vrsqrt.f32 %v1613_v26 }
 0xad3   :  { %v3251_v19 = vpop.eup %3250 }
 0xad4   :  { %v1616_v29 = vmul.f32 %v3251_v19, %v1598_v0  ;;  %v1618_v31 = vmul.f32 2.0, %v3251_v19  ;;  %v3253_v33 = vpop.eup %3252  ;;  %v1880_v0 = vld [vmem:[#allocation10 + $0x40] sm:$0xff] }
 0xad5   :  { %v3144_v23 = vpack.c.bf16 %v1881_v1, %v1880_v0  ;;  %v2163_v0 = vld [vmem:[#allocation12 + $0x58] sm:$0xff] }
 0xad6   :  { %v1617_v35 = vmul.f32 %v3253_v33, %v1616_v29  ;;  %v1619_v50 = vmul.f32 %v3251_v19, %v1618_v31 }
 0xad8   :  { %2843 = vmatmul.mubr.msk.f32.vlgmr.msra.gmra.mrb[12].mxu0 %vm1602_vm10, %v1617_v35  ;;  %v1707_v36 = vmul.f32 %v1703_v3, %v1619_v50  ;;  %v1883_v3 = vld [vmem:[#allocation10 + $0x58] sm:$0xff]  ;;  %v714_v35 = vsel %vm3874_vm13, 1.0, %v3426_v49  ;;  %vm4136_vm13 = vmmov %vm4124_vm0  ;;  %vm4138_vm0 = vnez %v4114_v15  ;;  %v2165_v15 = vld [vmem:[#allocation12 + $0x68] sm:$0xff] }
 0xad9   :  { %2847 = vmatprep.mubr.msk.f32.mxu0 %vm1602_vm10, %v1382_v13  ;;  %v3148_v11 = vpack.c.bf16 %v1883_v3, %v1882_v2  ;;  %v717_v52 = vsel %vm4138_vm0, 1.0, %v3426_v49  ;;  %v2166_v2 = vld [vmem:[#allocation12 + $0x70] sm:$0xff]  ;;  %v2167_v3 = vld [vmem:[#allocation12 + $0x78] sm:$0xff] }
 0xbab   :  { %v1777_v37 = vpop.f32.mrb[12].mxu0 }
 0xbac   :  { %v1778_v38 = vadd.f32 %v1777_v37, %v1707_v36  ;;  %v2844_v39 = vpop.f32.mrb[13].mxu0 }
 0xbad   :  { %v2152_v39 = vld [vmem:[#allocation12] sm:$0xff] }
 0xbae   :  { %v1787_v43 = vadd.f32 %v2421_v14, %v1778_v38 }
 0xbb0   :  { %v1788_v22 = vmax.f32 %v1787_v43, 0.0  ;;  %v3168_v43 = vpack.c.bf16 %v2153_v57, %v2152_v39 }
 0xbb2   :  { %2845 = vmatprep.subr.mxu0 %v1788_v22 }
 0xbb3   :  { %2846 = vmatpush3.msra.mxu0 %v1788_v22  ;;  %v2156_v22 = vld [vmem:[#allocation12 + $0x20] sm:$0xff] }
 0xbb4   :  { %2848 = vmatmul.mubr.msk.f32.vlgmr.msra.gmra.mrb[14].mxu0 %vm1602_vm10, %v1383_v61  ;;  %3129 = vmatprep.subr.bf16.mxu0 %v3128_v16 }
 0xbb5   :  { %3131 = vmatpush3.bf16.msra.mxu0 %v3128_v16  ;;  %v2157_v16 = vld [vmem:[#allocation12 + $0x28] sm:$0xff] }
 0xbb6   :  { %3133 = vmatprep.subr.bf16.mxu0 %v3132_v21  ;;  %v3176_v61 = vpack.c.bf16 %v2157_v16, %v2156_v22 }
 0xbb9   :  { %3135 = vmatpush3.bf16.msra.mxu0 %v3132_v21  ;;  %v716_v21 = vsel %vm3890_vm8, 1.0, %v3426_v49  ;;  %vm4140_vm8 = vmmov %vm4133_vm12 }
 0xbba   :  { %3137 = vmatprep.subr.bf16.mxu0 %v3136_v53  ;;  %vm4141_vm7 = vmmov %vm4140_vm8 }
 0xbbb   :  { %vm4142_vm11 = vmmov %vm4141_vm7 }
 0xbbd   :  { %3139 = vmatpush3.bf16.msra.mxu0 %v3136_v53  ;;  %v3180_v53 = vpack.c.bf16 %v2159_v56, %v2158_v18 }
 0xbbe   :  { %3141 = vmatprep.subr.bf16.mxu0 %v3140_v12 }
 0xbc1   :  { %3143 = vmatpush3.bf16.msra.mxu0 %v3140_v12  ;;  %v2162_v12 = vld [vmem:[#allocation12 + $0x50] sm:$0xff] }
 0xbc2   :  { %3145 = vmatprep.subr.bf16.mxu0 %v3144_v23  ;;  %v3188_v1 = vpack.c.bf16 %v2163_v0, %v2162_v12 }
 0xbc5   :  { %3147 = vmatpush3.bf16.msra.mxu0 %v3144_v23  ;;  %v2164_v23 = vld [vmem:[#allocation12 + $0x60] sm:$0xff] }
 0xbc6   :  { %3149 = vmatprep.subr.bf16.mxu0 %v3148_v11  ;;  %v3192_v49 = vpack.c.bf16 %v2165_v15, %v2164_v23 }
 0xbc9   :  { %3151 = vmatpush3.bf16.msra.mxu0 %v3148_v11  ;;  %v3196_v11 = vpack.c.bf16 %v2167_v3, %v2166_v2 }
 0xbca   :  { %3153 = vmatprep.subr.bf16.mxu0 %v3152_v10 }
 0xbcd   :  { %3155 = vmatpush3.bf16.msra.mxu0 %v3152_v10 }
 0xbce   :  { %3157 = vmatprep.subr.bf16.mxu0 %v3156_v41 }
 0xbd1   :  { %3159 = vmatpush3.bf16.msra.mxu0 %v3156_v41 }
 0xc87   :  { %v2849_v24 = vpop.f32.mrb[14].mxu0 }
 0xc88   :  { %v1861_v26 = vpop.f32.mrb[15].mxu0  ;;  %v1871_v19 = vadd.f32 %v2849_v24, %v3938_v6 }
 0xc89   :  { %v1870_v28 = vadd.f32 %v1861_v26, %v3940_v34 }
 0xc8b   :  { %2882 = vmatprep.mubr.f32.mxu0 %v1870_v28 }
 0xc8c   :  { %2883 = vmatmul.mubr.f32.vlgmr.msra.gmra.mrb[16].mxu0 %v1871_v19 }
 0xc8d   :  { %2948 = vmatprep.mubr.msk.f32.mxu0 %vm4133_vm12, %v3648_v51  ;;  %v2426_v51 = vld [vmem:[%s4087_s10] ss:$0 sm:$0xff] }
 0xd5f   :  { %v2884_v29 = vpop.f32.mrb[16].mxu0 }
 0xd60   :  { %v1955_v31 = vpop.f32.mrb[17].mxu0  ;;  %v1965_v6 = vmul.f32 %v2884_v29, %v3926_v59  ;;  %v2155_v59 = vld [vmem:[#allocation12 + $0x18] sm:$0xff] }
 0xd61   :  { %v3160_v33 = vpack.c.bf16 %v2884_v29, %v1955_v31  ;;  %v1964_v34 = vmul.f32 %v1955_v31, %v3928_v60  ;;  %v3172_v60 = vpack.c.bf16 %v2155_v59, %v2154_v45 }
 0xd63   :  { %3161 = vmatprep.subr.bf16.mxu1 %v3160_v33 }
 0xd64   :  { %3163 = vmatpush3.bf16.msra.mxu1 %v3160_v33 }
 0xd67   :  { %2890 = vmatmul.mubr.msk.f32.vlgmr.msra.gmra.mrb[26].mxu1 %vm4134_vm3, %v3906_v48 }
 0xd68   :  { %2896 = vmatprep.mubr.msk.f32.mxu1 %vm4135_vm6, %v714_v35 }
 0xe3a   :  { %v2891_v50 = vpop.f32.mrb[26].mxu1 }
 0xe3b   :  { %v2038_v13 = vadd.f32 %v2891_v50, %v1965_v6  ;;  %v2032_v36 = vpop.f32.mrb[27].mxu1 }
 0xe3c   :  { %v2033_v14 = vadd.f32 %v2032_v36, %v1964_v34 }
 0xe3d   :  { %v2048_v37 = vadd.f32 %v2426_v51, %v2038_v13 }
 0xe3e   :  { %v2047_v48 = vadd.f32 %v2426_v51, %v2033_v14 }
 0xe3f   :  { %v2050_v38 = vmax.f32 %v2048_v37, 0.0 }
 0xe40   :  { %v2049_v40 = vmax.f32 %v2047_v48, 0.0 }
 0xe42   :  { %v3164_v42 = vpack.c.bf16 %v2050_v38, %v2049_v40 }
 0xe44   :  { %3165 = vmatprep.subr.bf16.mxu1 %v3164_v42 }
 0xe45   :  { %3167 = vmatpush3.bf16.msra.mxu1 %v3164_v42 }
 0xe46   :  { %3169 = vmatprep.subr.bf16.mxu1 %v3168_v43 }
 0xe48   :  { %2897 = vmatmul.mubr.msk.f32.vlgmr.msra.gmra.mrb[28].mxu1 %vm4136_vm13, %v715_v46 }
 0xe49   :  { %2899 = vmatprep.mubr.msk.f32.mxu1 %vm4137_vm4, %v716_v21  ;;  %3171 = vmatpush3.bf16.msra.mxu1 %v3168_v43 }
 0xe4a   :  { %3173 = vmatprep.subr.bf16.mxu1 %v3172_v60 }
 0xe4c   :  { %2900 = vmatmul.mubr.msk.f32.gmra.mrb[30].mxu1 %vm4139_vm9, %v717_v52 }
 0xe4d   :  { %3175 = vmatpush3.bf16.msra.mxu1 %v3172_v60 }
 0xe4e   :  { %3177 = vmatprep.subr.bf16.mxu1 %v3176_v61 }
 0xe51   :  { %3179 = vmatpush3.bf16.msra.mxu1 %v3176_v61 }
 0xe52   :  { %3181 = vmatprep.subr.bf16.mxu1 %v3180_v53 }
 0xe55   :  { %3183 = vmatpush3.bf16.msra.mxu1 %v3180_v53 }
 0xe56   :  { %3185 = vmatprep.subr.bf16.mxu1 %v3184_v62 }
 0xe59   :  { %3187 = vmatpush3.bf16.msra.mxu1 %v3184_v62 }
 0xe5a   :  { %3189 = vmatprep.subr.bf16.mxu1 %v3188_v1 }
 0xe5d   :  { %3191 = vmatpush3.bf16.msra.mxu1 %v3188_v1 }
 0xe5e   :  { %3193 = vmatprep.subr.bf16.mxu1 %v3192_v49 }
 0xe61   :  { %3195 = vmatpush3.bf16.msra.mxu1 %v3192_v49 }
 0xe62   :  { %3197 = vmatprep.subr.bf16.mxu1 %v3196_v11 }
 0xe65   :  { %3199 = vmatpush3.bf16.msra.mxu1 %v3196_v11 }
 0xf1b   :  { %v2898_v4 = vpop.f32.mrb[28].mxu1 }
 0xf1c   :  { %v2129_v9 = vpop.f32.mrb[29].mxu1  ;;  %v2149_v63 = vadd.f32 %v2898_v4, %v3738_v44 }
 0xf1d   :  { %v2148_v10 = vadd.f32 %v2129_v9, %v3740_v47 }
 0xf1f   :  { %v2901_v20 = vpop.f32.mrb[30].mxu1  ;;  %2934 = vmatprep.mubr.f32.mxu1 %v2148_v10 }
 0xf20   :  { %v2139_v41 = vpop.f32.mrb[31].mxu1  ;;  %2935 = vmatmul.mubr.f32.vlgmr.msra.gmra.mrb[32].mxu1 %v2149_v63  ;;  %v2151_v26 = vadd.f32 %v2901_v20, %v3744_v54 }
 0xf21   :  { %v2150_v24 = vadd.f32 %v2139_v41, %v3746_v55  ;;  %v2435_v55 = vld [vmem:[%s4088_s11] ss:$0 sm:$0xff] }
 0xf23   :  { %2937 = vmatprep.mubr.f32.mxu1 %v2150_v24 }
 0xf24   :  { %2938 = vmatmul.mubr.f32.gmra.mrb[34].mxu1 %v2151_v26 }
 0xff3   :  { %v2936_v28 = vpop.f32.mrb[32].mxu1 }
 0xff4   :  { %v2235_v19 = vpop.f32.mrb[33].mxu1  ;;  %v2255_v44 = vmul.f32 %v2936_v28, %v3720_v25 }
 0xff5   :  { %v3200_v29 = vpack.c.bf16 %v2936_v28, %v2235_v19  ;;  %v2254_v54 = vmul.f32 %v2235_v19, %v3722_v27 }
 0xff7   :  { %v2939_v31 = vpop.f32.mrb[34].mxu1  ;;  %3201 = vmatprep.subr.bf16.mxu0 %v3200_v29 }
 0xff8   :  { %v2245_v33 = vpop.f32.mrb[35].mxu1  ;;  %3203 = vmatpush3.bf16.msra.mxu0 %v3200_v29 }
 0xff9   :  { %v3204_v47 = vpack.c.bf16 %v2939_v31, %v2245_v33 }
 0xffb   :  { %3205 = vmatprep.subr.bf16.mxu0 %v3204_v47 }
 0xffc   :  { %3207 = vmatpush3.bf16.msra.mxu0 %v3204_v47 }
 0xfff   :  { %2949 = vmatmul.mubr.msk.f32.vlgmr.msra.gmra.mrb[18].mxu0 %vm4140_vm8, %v3654_v5  ;;  %v2257_v5 = vmul.f32 %v2939_v31, %v3725_v30 }
0x1000   :  { %2951 = vmatprep.mubr.msk.f32.mxu0 %vm4141_vm7, %v3657_v7  ;;  %v2256_v7 = vmul.f32 %v2245_v33, %v3728_v32 }
0x1003   :  { %2952 = vmatmul.mubr.msk.f32.gmra.mrb[20].mxu0 %vm4142_vm11, %v3661_v8 }
0x10d2   :  { %v2950_v35 = vpop.f32.mrb[18].mxu0 }
0x10d3   :  { %v2330_v6 = vadd.f32 %v2950_v35, %v2255_v44  ;;  %v2324_v34 = vpop.f32.mrb[19].mxu0 }
0x10d4   :  { %v2325_v51 = vadd.f32 %v2324_v34, %v2254_v54 }
0x10d5   :  { %v2350_v50 = vadd.f32 %v2435_v55, %v2330_v6 }
0x10d6   :  { %v2349_v13 = vadd.f32 %v2435_v55, %v2325_v51  ;;  %v2953_v36 = vpop.f32.mrb[20].mxu0 }
0x10d7   :  { %2354 = vst [vmem:[%s4091_s14 + $0x8] sm:$0xff] %v2350_v50  ;;  %v2340_v8 = vadd.f32 %v2953_v36, %v2257_v5  ;;  %v2334_v25 = vpop.f32.mrb[21].mxu0 }
0x10d8   :  { %2353 = vst [vmem:[%s4091_s14] sm:$0xff] %v2349_v13  ;;  %v2335_v27 = vadd.f32 %v2334_v25, %v2256_v7 }
0x10d9   :  { %v2352_v14 = vadd.f32 %v2435_v55, %v2340_v8 }
0x10da   :  { %v2351_v37 = vadd.f32 %v2435_v55, %v2335_v27 }
0x10db   :  { %2356 = vst [vmem:[%s4091_s14 + $0x18] sm:$0xff] %v2352_v14 }
0x10dc   :  { %2355 = vst [vmem:[%s4091_s14 + $0x10] sm:$0xff] %v2351_v37 }
0x10dd   :  { %2361 = vsyncpa [#allocation3], 1 }
0x10de   :  { %2362 = vsyncpa [#allocation5], 1 }
0x10df   :  { %2363 = vsyncpa [#allocation8], 1 }
0x10e0   :  { %2364 = vsyncpa [#allocation11], 1 }

</bundles_post_ra>
